<compile_context>
chip_gen: v7x
topology: tpu7x:2x2x1
jax: 0.10.0
libtpu: 0.0.40
codegen_flags: <defaults>
</compile_context>

<pallas_src>
import jax
import jax.numpy as jnp
from jax import lax
from jax.experimental import pallas as pl
from jax.experimental.pallas import tpu as pltpu

BN_EPS = 1e-5
LANE = 128
MAX_ROW_TILE = 512
VMEM_LIMIT = 32 * 1024 * 1024


def _round_up(x, m):
    return (x + m - 1) // m * m


def _row_tile(r):
    return min(MAX_ROW_TILE, _round_up(r, 8))


def _pad_rows(x, rp):
    r = x.shape[0]
    if rp == r:
        return x
    return jnp.pad(x, ((0, rp - r), (0, 0)))


# ----------------------------- Pallas kernel bodies -----------------------------

def _matmul_stats_kernel(x_ref, w_ref, y_ref, sum_ref, sq_ref):
    """y = x @ w (bf16 x bf16 -> f32 acc); accumulate per-channel sum / sumsq."""
    @pl.when(pl.program_id(0) == 0)
    def _():
        sum_ref[...] = jnp.zeros_like(sum_ref)
        sq_ref[...] = jnp.zeros_like(sq_ref)

    y = jnp.dot(x_ref[...], w_ref[...], preferred_element_type=jnp.float32)
    y_ref[...] = y
    sum_ref[...] += jnp.sum(y, axis=0, keepdims=True)
    sq_ref[...] += jnp.sum(y * y, axis=0, keepdims=True)


def _make_affine_relu_matmul_stats_kernel(tr, r_valid):
    """a = relu(x*scale + shift); y = a @ w; accumulate stats (mask padded rows)."""
    def kernel(x_ref, scale_ref, shift_ref, w_ref, y_ref, sum_ref, sq_ref):
        i = pl.program_id(0)

        @pl.when(i == 0)
        def _():
            sum_ref[...] = jnp.zeros_like(sum_ref)
            sq_ref[...] = jnp.zeros_like(sq_ref)

        a = jnp.maximum(x_ref[...] * scale_ref[...] + shift_ref[...], 0.0)
        row = i * tr + lax.broadcasted_iota(jnp.int32, (tr, 1), 0)
        a = jnp.where(row < r_valid, a, 0.0)   # keep padded rows out of stats
        y = jnp.dot(a.astype(jnp.bfloat16), w_ref[...],
                    preferred_element_type=jnp.float32)
        y_ref[...] = y
        sum_ref[...] += jnp.sum(y, axis=0, keepdims=True)
        sq_ref[...] += jnp.sum(y * y, axis=0, keepdims=True)

    return kernel


def _matmul_bias_kernel(x_ref, w_ref, b_ref, y_ref):
    y_ref[...] = (jnp.dot(x_ref[...], w_ref[...],
                          preferred_element_type=jnp.float32) + b_ref[...])


def _make_affine_kernel(relu, add_res):
    def kernel(*refs):
        if add_res:
            y_ref, scale_ref, shift_ref, r_ref, o_ref = refs
        else:
            y_ref, scale_ref, shift_ref, o_ref = refs
        y = y_ref[...] * scale_ref[...] + shift_ref[...]
        if relu:
            y = jnp.maximum(y, 0.0)
        if add_res:
            y = y + r_ref[...]
        o_ref[...] = y
    return kernel


# ------------------------------ pallas_call wrappers -----------------------------

def _compiler_params(semantics):
    return pltpu.CompilerParams(dimension_semantics=semantics,
                                vmem_limit_bytes=VMEM_LIMIT)


def matmul_stats(patches_bf16, w_bf16):
    """Tiled (R, K) @ (K, Cpad) -> y (R, Cpad) f32, plus per-channel sum / sumsq."""
    r, k = patches_bf16.shape
    cpad = w_bf16.shape[1]
    tr = _row_tile(r)
    rp = _round_up(r, tr)
    xp = _pad_rows(patches_bf16, rp)
    cost = pl.CostEstimate(flops=2 * rp * k * cpad, transcendentals=0,
                           bytes_accessed=int(xp.size * 2 + w_bf16.size * 2 +
                                              rp * cpad * 4))
    y, s, q = pl.pallas_call(
        _matmul_stats_kernel,
        grid=(rp // tr,),
        in_specs=[pl.BlockSpec((tr, k), lambda i: (i, 0)),
                  pl.BlockSpec((k, cpad), lambda i: (0, 0))],
        out_specs=[pl.BlockSpec((tr, cpad), lambda i: (i, 0)),
                   pl.BlockSpec((1, cpad), lambda i: (0, 0)),
                   pl.BlockSpec((1, cpad), lambda i: (0, 0))],
        out_shape=[jax.ShapeDtypeStruct((rp, cpad), jnp.float32),
                   jax.ShapeDtypeStruct((1, cpad), jnp.float32),
                   jax.ShapeDtypeStruct((1, cpad), jnp.float32)],
        compiler_params=_compiler_params(("arbitrary",)),   # stats accumulator
        cost_estimate=cost,
    )(xp, w_bf16)
    return y[:r], s, q


def affine_relu_matmul_stats(h, scale, shift, w_bf16):
    """Fused BN-apply + ReLU + 1x1-conv matmul + next-BN stats (tiled over rows)."""
    r, cin = h.shape
    cpad = w_bf16.shape[1]
    tr = _row_tile(r)
    rp = _round_up(r, tr)
    hp = _pad_rows(h, rp)
    cost = pl.CostEstimate(flops=2 * rp * cin * cpad, transcendentals=0,
                           bytes_accessed=int(hp.size * 4 + w_bf16.size * 2 +
                                              rp * cpad * 4))
    y, s, q = pl.pallas_call(
        _make_affine_relu_matmul_stats_kernel(tr, r),
        grid=(rp // tr,),
        in_specs=[pl.BlockSpec((tr, cin), lambda i: (i, 0)),
                  pl.BlockSpec((1, cin), lambda i: (0, 0)),
                  pl.BlockSpec((1, cin), lambda i: (0, 0)),
                  pl.BlockSpec((cin, cpad), lambda i: (0, 0))],
        out_specs=[pl.BlockSpec((tr, cpad), lambda i: (i, 0)),
                   pl.BlockSpec((1, cpad), lambda i: (0, 0)),
                   pl.BlockSpec((1, cpad), lambda i: (0, 0))],
        out_shape=[jax.ShapeDtypeStruct((rp, cpad), jnp.float32),
                   jax.ShapeDtypeStruct((1, cpad), jnp.float32),
                   jax.ShapeDtypeStruct((1, cpad), jnp.float32)],
        compiler_params=_compiler_params(("arbitrary",)),
        cost_estimate=cost,
    )(hp, scale, shift, w_bf16)
    return y[:r], s, q


def matmul_bias(patches_bf16, w_bf16, bias):
    """Tiled matmul + bias (final layer: no BN / ReLU / stats)."""
    r, k = patches_bf16.shape
    cpad = w_bf16.shape[1]
    tr = _row_tile(r)
    rp = _round_up(r, tr)
    xp = _pad_rows(patches_bf16, rp)
    cost = pl.CostEstimate(flops=2 * rp * k * cpad, transcendentals=0,
                           bytes_accessed=int(xp.size * 2 + w_bf16.size * 2 +
                                              rp * cpad * 4))
    y = pl.pallas_call(
        _matmul_bias_kernel,
        grid=(rp // tr,),
        in_specs=[pl.BlockSpec((tr, k), lambda i: (i, 0)),
                  pl.BlockSpec((k, cpad), lambda i: (0, 0)),
                  pl.BlockSpec((1, cpad), lambda i: (0, 0))],
        out_specs=pl.BlockSpec((tr, cpad), lambda i: (i, 0)),
        out_shape=jax.ShapeDtypeStruct((rp, cpad), jnp.float32),
        compiler_params=_compiler_params(("parallel",)),
        cost_estimate=cost,
    )(xp, w_bf16, bias)
    return y[:r]


def affine_apply(y, scale, shift, residual=None, relu=False):
    """Tiled per-channel affine (BN apply) + optional ReLU + optional residual add."""
    r, c = y.shape
    tr = _row_tile(r)
    rp = _round_up(r, tr)
    inputs = [_pad_rows(y, rp), scale, shift]
    in_specs = [pl.BlockSpec((tr, c), lambda i: (i, 0)),
                pl.BlockSpec((1, c), lambda i: (0, 0)),
                pl.BlockSpec((1, c), lambda i: (0, 0))]
    if residual is not None:
        inputs.append(_pad_rows(residual, rp))
        in_specs.append(pl.BlockSpec((tr, c), lambda i: (i, 0)))
    out = pl.pallas_call(
        _make_affine_kernel(relu, residual is not None),
        grid=(rp // tr,),
        in_specs=in_specs,
        out_specs=pl.BlockSpec((tr, c), lambda i: (i, 0)),
        out_shape=jax.ShapeDtypeStruct((rp, c), jnp.float32),
        compiler_params=_compiler_params(("parallel",)),
    )(*inputs)
    return out[:r]


# --------------------------------- JAX glue --------------------------------------

def bn_scale_shift(s, q, count, gamma, beta):
    """Training-mode BatchNorm: biased stats over `count` rows -> per-channel affine."""
    mean = s / count
    var = jnp.maximum(q / count - mean * mean, 0.0)
    scale = gamma * lax.rsqrt(var + BN_EPS)
    shift = beta - mean * scale
    return scale, shift


def im2col(x_nhwc, kh, kw, pad_h, pad_w):
    """Stride-1 patches. pad_h / pad_w: (before, after). -> (N*Ho*Wo, kh*kw*C)."""
    xp = jnp.pad(x_nhwc, ((0, 0), pad_h, pad_w, (0, 0)))
    n, hp, wp, c = xp.shape
    ho, wo = hp - kh + 1, wp - kw + 1
    cols = [xp[:, i:i + ho, j:j + wo, :] for i in range(kh) for j in range(kw)]
    patches = jnp.concatenate(cols, axis=-1)
    return patches.reshape(n * ho * wo, kh * kw * c), (n, ho, wo)


# Sub-pixel phase input paddings ((top, bottom), (left, right)) for phases
# (even,even), (even,odd), (odd,even), (odd,odd).
_PHASE_PADS = (((1, 0), (1, 0)),
               ((1, 0), (0, 1)),
               ((0, 1), (1, 0)),
               ((0, 1), (0, 1)))


# ------------------------- weight preparation (one-time) -------------------------

def _pad_cols(m, cpad):
    return jnp.pad(m, ((0, 0), (0, cpad - m.shape[1])))


def _pad_vec(v, cpad):
    return jnp.pad(v.reshape(1, -1), ((0, 0), (0, cpad - v.shape[0]))).astype(jnp.float32)


def conv_w_to_mat(w, cpad):
    """PyTorch Conv2d weight (Cout, Cin, kh, kw) -> (kh*kw*Cin, Cpad) bf16."""
    m = jnp.transpose(w, (2, 3, 1, 0)).reshape(-1, w.shape[0])
    return _pad_cols(m, cpad).astype(jnp.bfloat16)


def convt_s1_w_to_mat(w, cpad):
    """ConvTranspose2d(stride=1) weight (Cin, Cout, kh, kw) -> equivalent-conv matrix."""
    wf = w[:, :, ::-1, ::-1]
    m = jnp.transpose(wf, (2, 3, 0, 1)).reshape(-1, w.shape[1])
    return _pad_cols(m, cpad).astype(jnp.bfloat16)


def convt_s2_phase_mats(w, cpad):
    """ConvTranspose2d(k=4, s=2, p=1) weight (Cin, Cout, 4, 4) -> 4 sub-pixel
    weight matrices (2*2*Cin, Cpad), one per output phase (py, px):
      out[2m+py, 2n+px] = sum_{i,j in {0,1}} inp[...] * w[:, :, 3-py-2i, 3-px-2j]."""
    cin, cout = w.shape[0], w.shape[1]
    mats = []
    for py in range(2):
        for px in range(2):
            sub = jnp.take(w, jnp.array([3 - py, 1 - py]), axis=2)
            sub = jnp.take(sub, jnp.array([3 - px, 1 - px]), axis=3)
            m = jnp.transpose(sub, (2, 3, 0, 1)).reshape(4 * cin, cout)
            mats.append(_pad_cols(m, cpad).astype(jnp.bfloat16))
    return mats


def init_decoder_params(key, dim_z, num_rb):
    """PyTorch-layout parameters (like a freshly constructed VQVAEDecoder)."""
    def nrm(k, shape, scale=0.05):
        return scale * jax.random.normal(k, shape, jnp.float32)

    keys = iter(jax.random.split(key, 8 * num_rb + 16))
    res = []
    for _ in range(num_rb):
        res.append(dict(
            w1=nrm(next(keys), (dim_z, dim_z, 3, 3)),   # Conv2d(dim, dim, 3, 1, 1)
            b1=nrm(next(keys), (dim_z,)),               # cancelled by the following BN
            g1=jnp.ones((dim_z,), jnp.float32),
            be1=jnp.zeros((dim_z,), jnp.float32),
            w2=nrm(next(keys), (dim_z, dim_z, 1, 1)),   # Conv2d(dim, dim, 1)
            b2=nrm(next(keys), (dim_z,)),               # cancelled by the following BN
            g2=jnp.ones((dim_z,), jnp.float32),
            be2=jnp.zeros((dim_z,), jnp.float32),
        ))
    convt = dict(
        wt1=nrm(next(keys), (dim_z, dim_z, 3, 3)),       # ConvTranspose2d(dz, dz, 3, 1, 1)
        bt1=nrm(next(keys), (dim_z,)),                   # cancelled by the following BN
        g1=jnp.ones((dim_z,), jnp.float32),
        be1=jnp.zeros((dim_z,), jnp.float32),
        wt2=nrm(next(keys), (dim_z, dim_z // 2, 4, 4)),  # ConvTranspose2d(dz, dz//2, 4, 2, 1)
        bt2=nrm(next(keys), (dim_z // 2,)),              # cancelled by the following BN
        g2=jnp.ones((dim_z // 2,), jnp.float32),
        be2=jnp.zeros((dim_z // 2,), jnp.float32),
        wt3=nrm(next(keys), (dim_z // 2, 3, 4, 4)),      # ConvTranspose2d(dz//2, 3, 4, 2, 1)
        bt3=nrm(next(keys), (3,)),
    )
    return dict(res=res, convt=convt)


def prepare_params(params, dim_z):
    """One-time conversion to padded, matmul-layout, bf16 weights (hoisted out of fwd)."""
    cz_pad = _round_up(dim_z, LANE)
    ch_pad = _round_up(dim_z // 2, LANE)
    c3_pad = _round_up(3, LANE)
    res = []
    for blk in params["res"]:
        w2 = conv_w_to_mat(blk["w2"], cz_pad)                   # (Cz, Cz_pad)
        w2 = jnp.pad(w2, ((0, cz_pad - w2.shape[0]), (0, 0)))   # pad K to padded width
        res.append(dict(
            w1=conv_w_to_mat(blk["w1"], cz_pad),
            g1=_pad_vec(blk["g1"], cz_pad), be1=_pad_vec(blk["be1"], cz_pad),
            w2=w2,
            g2=_pad_vec(blk["g2"], cz_pad), be2=_pad_vec(blk["be2"], cz_pad),
        ))
    ct = params["convt"]
    convt = dict(
        wt1=convt_s1_w_to_mat(ct["wt1"], cz_pad),
        g1=_pad_vec(ct["g1"], cz_pad), be1=_pad_vec(ct["be1"], cz_pad),
        wt2_phases=convt_s2_phase_mats(ct["wt2"], ch_pad),
        g2=_pad_vec(ct["g2"], ch_pad), be2=_pad_vec(ct["be2"], ch_pad),
        wt3_phases=convt_s2_phase_mats(ct["wt3"], c3_pad),
        bt3=_pad_vec(ct["bt3"], c3_pad),
    )
    # Conv biases b1/b2/bt1/bt2 are intentionally dropped: the BatchNorm that
    # immediately follows each of those convs cancels any per-channel constant.
    return dict(res=res, convt=convt)


# --------------------------------- forward pass -----------------------------------

def _interleave_phases(phase_outs, n, h, w, cout):
    """[(even,even), (even,odd), (odd,even), (odd,odd)] each (n*h*w, Cpad)
    -> (n, 2h, 2w, cout)."""
    cpad = phase_outs[0].shape[-1]
    ph = jnp.stack(phase_outs, axis=1).reshape(n, h, w, 2, 2, cpad)
    out = jnp.transpose(ph, (0, 1, 3, 2, 4, 5)).reshape(n, 2 * h, 2 * w, cpad)
    return out[..., :cout]


def _convt_stride2_bn_relu(x_nhwc, phase_ws, gamma, beta, cout):
    """ConvTranspose2d(k=4, s=2, p=1) + BN + ReLU via 4 sub-pixel phase matmuls."""
    n, h, w, _ = x_nhwc.shape
    xb = x_nhwc.astype(jnp.bfloat16)
    ys, ss, qs = [], [], []
    for w_mat, (ph, pw) in zip(phase_ws, _PHASE_PADS):
        p, _ = im2col(xb, 2, 2, ph, pw)
        yk, sk, qk = matmul_stats(p, w_mat)
        ys.append(yk); ss.append(sk); qs.append(qk)
    count = 4 * n * h * w                      # BN stats over the full 2h x 2w output
    scale, shift = bn_scale_shift(sum(ss), sum(qs), count, gamma, beta)
    outs = [affine_apply(y, scale, shift, relu=True) for y in ys]
    return _interleave_phases(outs, n, h, w, cout)


def _convt_stride2_bias(x_nhwc, phase_ws, bias, cout):
    """Final ConvTranspose2d(k=4, s=2, p=1) with bias, no BN / ReLU."""
    n, h, w, _ = x_nhwc.shape
    xb = x_nhwc.astype(jnp.bfloat16)
    ys = []
    for w_mat, (ph, pw) in zip(phase_ws, _PHASE_PADS):
        p, _ = im2col(xb, 2, 2, ph, pw)
        ys.append(matmul_bias(p, w_mat, bias))
    return _interleave_phases(ys, n, h, w, cout)


def vqvae_decoder_forward(z_nchw, prep):
    x = jnp.transpose(z_nchw, (0, 2, 3, 1)).astype(jnp.float32)   # NCHW -> NHWC
    n, h, w, c = x.shape
    r = n * h * w

    # --- ResBlocks: x + BN2(Conv1x1(ReLU(BN1(Conv3x3(ReLU(x)))))) ---
    for blk in prep["res"]:
        cpad = blk["w1"].shape[1]
        x_flat = x.reshape(r, c)
        # ReLU on the un-expanded activation; bf16 cast fused into the im2col producer.
        p1, _ = im2col(jnp.maximum(x, 0.0).astype(jnp.bfloat16), 3, 3, (1, 1), (1, 1))
        h1, s1, q1 = matmul_stats(p1, blk["w1"])
        sc1, sh1 = bn_scale_shift(s1, q1, r, blk["g1"], blk["be1"])
        h2, s2, q2 = affine_relu_matmul_stats(h1, sc1, sh1, blk["w2"])
        sc2, sh2 = bn_scale_shift(s2, q2, r, blk["g2"], blk["be2"])
        res_pad = jnp.pad(x_flat, ((0, 0), (0, cpad - c)))
        out = affine_apply(h2, sc2, sh2, residual=res_pad)
        x = out[:, :c].reshape(n, h, w, c)

    ct = prep["convt"]

    # --- ConvTranspose2d(dz, dz, 3, s=1, p=1) + BN + ReLU (== flipped conv, pad 1) ---
    p, _ = im2col(x.astype(jnp.bfloat16), 3, 3, (1, 1), (1, 1))
    y, s, q = matmul_stats(p, ct["wt1"])
    sc, sh = bn_scale_shift(s, q, r, ct["g1"], ct["be1"])
    y = affine_apply(y, sc, sh, relu=True)
    x = y[:, :c].reshape(n, h, w, c)

    # --- ConvTranspose2d(dz, dz//2, 4, s=2, p=1) + BN + ReLU (sub-pixel) ---
    x = _convt_stride2_bn_relu(x, ct["wt2_phases"], ct["g2"], ct["be2"], c // 2)

    # --- ConvTranspose2d(dz//2, 3, 4, s=2, p=1) (final: bias only) ---
    x = _convt_stride2_bias(x, ct["wt3_phases"], ct["bt3"], 3)

    return jnp.transpose(x, (0, 3, 1, 2))   # NHWC -> NCHW


# ------------------------------------ main -----------------------------------------
if __name__ == "__main__":
    B, dim_z, H, W = 2, 32, 8, 8
    num_rb = 2   # module default is 6; same per-block semantics

    key = jax.random.PRNGKey(0)
    kp, kz = jax.random.split(key)
    raw_params = init_decoder_params(kp, dim_z, num_rb)
    prep = prepare_params(raw_params, dim_z)          # one-time weight layout prep
    z = jax.random.normal(kz, (B, dim_z, H, W), jnp.float32)

    fwd = jax.jit(vqvae_decoder_forward)
    out = jax.block_until_ready(fwd(z, prep))

    assert out.shape == (B, 3, 4 * H, 4 * W), out.shape
    assert out.dtype == jnp.float32
    assert bool(jnp.all(jnp.isfinite(out)))
    print("KERNEL_OK")
</pallas_src>

<mosaic_0001>
module attributes {stable_mosaic.version = 11 : i64} {
  func.func @kernel(%arg0: i32, %arg1: memref<128x128xf32, #tpu.memory_space<vmem>>, %arg2: memref<1x128xf32, #tpu.memory_space<vmem>>, %arg3: memref<1x128xf32, #tpu.memory_space<vmem>>, %arg4: memref<128x128xf32, #tpu.memory_space<vmem>>, %arg5: memref<128x128xf32, #tpu.memory_space<vmem>>) attributes {dimension_semantics = [#tpu.dimension_semantics<parallel>], iteration_bounds = array<i64: 1>, scalar_prefetch = 0 : i64, scratch_operands = 0 : i64, tpu.core_type = #tpu.core_type<tc>, window_params = [{transform_indices = @transform_0, window_bounds = array<i64: 128, 128>}, {pipeline_mode = #tpu.pipeline_mode<synchronous>, transform_indices = @transform_1, window_bounds = array<i64: 1, 128>}, {pipeline_mode = #tpu.pipeline_mode<synchronous>, transform_indices = @transform_2, window_bounds = array<i64: 1, 128>}, {transform_indices = @transform_3, window_bounds = array<i64: 128, 128>}, {transform_indices = @transform_4, window_bounds = array<i64: 128, 128>}]} {
    %c0 = arith.constant 0 : index
    %c0_0 = arith.constant 0 : index
    %0 = vector.load %arg1[%c0, %c0_0] : memref<128x128xf32, #tpu.memory_space<vmem>>, vector<128x128xf32>
    %c0_1 = arith.constant 0 : index
    %c0_2 = arith.constant 0 : index
    %1 = vector.load %arg2[%c0_1, %c0_2] : memref<1x128xf32, #tpu.memory_space<vmem>>, vector<1x128xf32>
    %2 = vector.broadcast %1 : vector<1x128xf32> to vector<128x128xf32>
    %3 = arith.mulf %0, %2 : vector<128x128xf32>
    %c0_3 = arith.constant 0 : index
    %c0_4 = arith.constant 0 : index
    %4 = vector.load %arg3[%c0_3, %c0_4] : memref<1x128xf32, #tpu.memory_space<vmem>>, vector<1x128xf32>
    %5 = vector.broadcast %4 : vector<1x128xf32> to vector<128x128xf32>
    %6 = arith.addf %3, %5 : vector<128x128xf32>
    %c0_5 = arith.constant 0 : index
    %c0_6 = arith.constant 0 : index
    %7 = vector.load %arg4[%c0_5, %c0_6] : memref<128x128xf32, #tpu.memory_space<vmem>>, vector<128x128xf32>
    %8 = arith.addf %6, %7 : vector<128x128xf32>
    %c0_7 = arith.constant 0 : index
    %c0_8 = arith.constant 0 : index
    %9 = vector.load %arg5[%c0_7, %c0_8] : memref<128x128xf32, #tpu.memory_space<vmem>>, vector<128x128xf32>
    tpu.vector_store %arg5[%c0_7, %c0_8], %8 {strides = array<i32>} : memref<128x128xf32, #tpu.memory_space<vmem>>, vector<128x128xf32>,
    return
  }
  func.func @transform_0(%arg0: i32) -> (i32, i32) {
    %c0_i32 = arith.constant 0 : i32
    %c0_i32_0 = arith.constant 0 : i32
    return %arg0, %c0_i32 : i32, i32
  }
  func.func @transform_1(%arg0: i32) -> (i32, i32) {
    %c0_i32 = arith.constant 0 : i32
    %c0_i32_0 = arith.constant 0 : i32
    %c0_i32_1 = arith.constant 0 : i32
    return %c0_i32, %c0_i32_0 : i32, i32
  }
  func.func @transform_2(%arg0: i32) -> (i32, i32) {
    %c0_i32 = arith.constant 0 : i32
    %c0_i32_0 = arith.constant 0 : i32
    %c0_i32_1 = arith.constant 0 : i32
    return %c0_i32, %c0_i32_0 : i32, i32
  }
  func.func @transform_3(%arg0: i32) -> (i32, i32) {
    %c0_i32 = arith.constant 0 : i32
    %c0_i32_0 = arith.constant 0 : i32
    return %arg0, %c0_i32 : i32, i32
  }
  func.func @transform_4(%arg0: i32) -> (i32, i32) {
    %c0_i32 = arith.constant 0 : i32
    %c0_i32_0 = arith.constant 0 : i32
    return %arg0, %c0_i32 : i32, i32
  }
}

module attributes {stable_mosaic.version = 11 : i64} {
  func.func @kernel(%arg0: i32, %arg1: memref<128x128xf32, #tpu.memory_space<vmem>>, %arg2: memref<1x128xf32, #tpu.memory_space<vmem>>, %arg3: memref<1x128xf32, #tpu.memory_space<vmem>>, %arg4: memref<128x128xbf16, #tpu.memory_space<vmem>>, %arg5: memref<128x128xf32, #tpu.memory_space<vmem>>, %arg6: memref<1x128xf32, #tpu.memory_space<vmem>>, %arg7: memref<1x128xf32, #tpu.memory_space<vmem>>) attributes {dimension_semantics = [#tpu.dimension_semantics<arbitrary>], iteration_bounds = array<i64: 1>, scalar_prefetch = 0 : i64, scratch_operands = 0 : i64, tpu.core_type = #tpu.core_type<tc>, window_params = [{transform_indices = @transform_0, window_bounds = array<i64: 128, 128>}, {pipeline_mode = #tpu.pipeline_mode<synchronous>, transform_indices = @transform_1, window_bounds = array<i64: 1, 128>}, {pipeline_mode = #tpu.pipeline_mode<synchronous>, transform_indices = @transform_2, window_bounds = array<i64: 1, 128>}, {pipeline_mode = #tpu.pipeline_mode<synchronous>, transform_indices = @transform_3, window_bounds = array<i64: 128, 128>}, {transform_indices = @transform_4, window_bounds = array<i64: 128, 128>}, {pipeline_mode = #tpu.pipeline_mode<synchronous>, transform_indices = @transform_5, window_bounds = array<i64: 1, 128>}, {pipeline_mode = #tpu.pipeline_mode<synchronous>, transform_indices = @transform_6, window_bounds = array<i64: 1, 128>}]} {
    %c0_i32 = arith.constant 0 : i32
    %0 = arith.cmpi eq, %arg0, %c0_i32 : i32
    %1 = arith.extui %0 : i1 to i32
    %c0_i32_0 = arith.constant 0 : i32
    %2 = arith.cmpi ne, %1, %c0_i32_0 : i32
    scf.if %2 {
      %cst_23 = arith.constant 0.000000e+00 : f32
      %37 = vector.broadcast %cst_23 : f32 to vector<1x128xf32>
      %c0_24 = arith.constant 0 : index
      %c0_25 = arith.constant 0 : index
      %38 = vector.load %arg6[%c0_24, %c0_25] : memref<1x128xf32, #tpu.memory_space<vmem>>, vector<1x128xf32>
      tpu.vector_store %arg6[%c0_24, %c0_25], %37 {strides = array<i32>} : memref<1x128xf32, #tpu.memory_space<vmem>>, vector<1x128xf32>,
      %cst_26 = arith.constant 0.000000e+00 : f32
      %39 = vector.broadcast %cst_26 : f32 to vector<1x128xf32>
      %c0_27 = arith.constant 0 : index
      %c0_28 = arith.constant 0 : index
      %40 = vector.load %arg7[%c0_27, %c0_28] : memref<1x128xf32, #tpu.memory_space<vmem>>, vector<1x128xf32>
      tpu.vector_store %arg7[%c0_27, %c0_28], %39 {strides = array<i32>} : memref<1x128xf32, #tpu.memory_space<vmem>>, vector<1x128xf32>,
    } else {
    }
    %c0 = arith.constant 0 : index
    %c0_1 = arith.constant 0 : index
    %3 = vector.load %arg1[%c0, %c0_1] : memref<128x128xf32, #tpu.memory_space<vmem>>, vector<128x128xf32>
    %c0_2 = arith.constant 0 : index
    %c0_3 = arith.constant 0 : index
    %4 = vector.load %arg2[%c0_2, %c0_3] : memref<1x128xf32, #tpu.memory_space<vmem>>, vector<1x128xf32>
    %5 = vector.broadcast %4 : vector<1x128xf32> to vector<128x128xf32>
    %6 = arith.mulf %3, %5 : vector<128x128xf32>
    %c0_4 = arith.constant 0 : index
    %c0_5 = arith.constant 0 : index
    %7 = vector.load %arg3[%c0_4, %c0_5] : memref<1x128xf32, #tpu.memory_space<vmem>>, vector<1x128xf32>
    %8 = vector.broadcast %7 : vector<1x128xf32> to vector<128x128xf32>
    %9 = arith.addf %6, %8 : vector<128x128xf32>
    %cst = arith.constant 0.000000e+00 : f32
    %10 = vector.broadcast %cst : f32 to vector<128x128xf32>
    %11 = arith.maximumf %9, %10 : vector<128x128xf32>
    %c128_i32 = arith.constant 128 : i32
    %12 = arith.muli %arg0, %c128_i32 : i32
    %13 = tpu.iota {dimensions = array<i32: 0>} : vector<128x1xi32>
    %14 = vector.broadcast %12 : i32 to vector<128x1xi32>
    %15 = arith.addi %14, %13 : vector<128x1xi32>
    %c128_i32_6 = arith.constant 128 : i32
    %16 = vector.broadcast %c128_i32_6 : i32 to vector<128x1xi32>
    %17 = arith.cmpi slt, %15, %16 : vector<128x1xi32>
    %cst_7 = arith.constant 0.000000e+00 : f32
    %18 = vector.shape_cast %17 : vector<128x1xi1> to vector<128x1xi1>
    %19 = vector.broadcast %18 : vector<128x1xi1> to vector<128x128xi1>
    %20 = vector.broadcast %cst_7 : f32 to vector<128x128xf32>
    %21 = arith.select %19, %11, %20 : vector<128x128xi1>, vector<128x128xf32>
    %22 = arith.truncf %21 : vector<128x128xf32> to vector<128x128xbf16>
    %c0_8 = arith.constant 0 : index
    %c0_9 = arith.constant 0 : index
    %23 = vector.load %arg4[%c0_8, %c0_9] : memref<128x128xbf16, #tpu.memory_space<vmem>>, vector<128x128xbf16>
    %cst_10 = arith.constant dense<0.000000e+00> : vector<128x128xf32>
    %24 = tpu.matmul %22, %23, %cst_10 {dimension_numbers = #tpu.dot_dimension_numbers<[1], [0], [0], [1], [0, 0, 1, 1], [], []>} : vector<128x128xbf16>, vector<128x128xbf16>, vector<128x128xf32> -> vector<128x128xf32>
    %c0_11 = arith.constant 0 : index
    %c0_12 = arith.constant 0 : index
    %25 = vector.load %arg5[%c0_11, %c0_12] : memref<128x128xf32, #tpu.memory_space<vmem>>, vector<128x128xf32>
    tpu.vector_store %arg5[%c0_11, %c0_12], %24 {strides = array<i32>} : memref<128x128xf32, #tpu.memory_space<vmem>>, vector<128x128xf32>,
    %c0_13 = arith.constant 0 : index
    %c0_14 = arith.constant 0 : index
    %26 = vector.load %arg6[%c0_13, %c0_14] : memref<1x128xf32, #tpu.memory_space<vmem>>, vector<1x128xf32>
    %cst_15 = arith.constant dense<0.000000e+00> : vector<128xf32>
    %27 = vector.multi_reduction <add>, %24, %cst_15 [0] : vector<128x128xf32> to vector<128xf32>
    %28 = vector.shape_cast %27 : vector<128xf32> to vector<1x128xf32>
    %29 = arith.addf %26, %28 : vector<1x128xf32>
    %c0_16 = arith.constant 0 : index
    %c0_17 = arith.constant 0 : index
    %30 = vector.load %arg6[%c0_16, %c0_17] : memref<1x128xf32, #tpu.memory_space<vmem>>, vector<1x128xf32>
    tpu.vector_store %arg6[%c0_16, %c0_17], %29 {strides = array<i32>} : memref<1x128xf32, #tpu.memory_space<vmem>>, vector<1x128xf32>,
    %c0_18 = arith.constant 0 : index
    %c0_19 = arith.constant 0 : index
    %31 = vector.load %arg7[%c0_18, %c0_19] : memref<1x128xf32, #tpu.memory_space<vmem>>, vector<1x128xf32>
    %32 = arith.mulf %24, %24 : vector<128x128xf32>
    %cst_20 = arith.constant dense<0.000000e+00> : vector<128xf32>
    %33 = vector.multi_reduction <add>, %32, %cst_20 [0] : vector<128x128xf32> to vector<128xf32>
    %34 = vector.shape_cast %33 : vector<128xf32> to vector<1x128xf32>
    %35 = arith.addf %31, %34 : vector<1x128xf32>
    %c0_21 = arith.constant 0 : index
    %c0_22 = arith.constant 0 : index
    %36 = vector.load %arg7[%c0_21, %c0_22] : memref<1x128xf32, #tpu.memory_space<vmem>>, vector<1x128xf32>
    tpu.vector_store %arg7[%c0_21, %c0_22], %35 {strides = array<i32>} : memref<1x128xf32, #tpu.memory_space<vmem>>, vector<1x128xf32>,
    return
  }
  func.func @transform_0(%arg0: i32) -> (i32, i32) {
    %c0_i32 = arith.constant 0 : i32
    %c0_i32_0 = arith.constant 0 : i32
    return %arg0, %c0_i32 : i32, i32
  }
  func.func @transform_1(%arg0: i32) -> (i32, i32) {
    %c0_i32 = arith.constant 0 : i32
    %c0_i32_0 = arith.constant 0 : i32
    %c0_i32_1 = arith.constant 0 : i32
    return %c0_i32, %c0_i32_0 : i32, i32
  }
  func.func @transform_2(%arg0: i32) -> (i32, i32) {
    %c0_i32 = arith.constant 0 : i32
    %c0_i32_0 = arith.constant 0 : i32
    %c0_i32_1 = arith.constant 0 : i32
    return %c0_i32, %c0_i32_0 : i32, i32
  }
  func.func @transform_3(%arg0: i32) -> (i32, i32) {
    %c0_i32 = arith.constant 0 : i32
    %c0_i32_0 = arith.constant 0 : i32
    %c0_i32_1 = arith.constant 0 : i32
    return %c0_i32, %c0_i32_0 : i32, i32
  }
  func.func @transform_4(%arg0: i32) -> (i32, i32) {
    %c0_i32 = arith.constant 0 : i32
    %c0_i32_0 = arith.constant 0 : i32
    return %arg0, %c0_i32 : i32, i32
  }
  func.func @transform_5(%arg0: i32) -> (i32, i32) {
    %c0_i32 = arith.constant 0 : i32
    %c0_i32_0 = arith.constant 0 : i32
    %c0_i32_1 = arith.constant 0 : i32
    return %c0_i32, %c0_i32_0 : i32, i32
  }
  func.func @transform_6(%arg0: i32) -> (i32, i32) {
    %c0_i32 = arith.constant 0 : i32
    %c0_i32_0 = arith.constant 0 : i32
    %c0_i32_1 = arith.constant 0 : i32
    return %c0_i32, %c0_i32_0 : i32, i32
  }
}

module attributes {stable_mosaic.version = 11 : i64} {
  func.func @_matmul_stats_kernel(%arg0: i32, %arg1: memref<128x288xbf16, #tpu.memory_space<vmem>>, %arg2: memref<288x128xbf16, #tpu.memory_space<vmem>>, %arg3: memref<128x128xf32, #tpu.memory_space<vmem>>, %arg4: memref<1x128xf32, #tpu.memory_space<vmem>>, %arg5: memref<1x128xf32, #tpu.memory_space<vmem>>) attributes {dimension_semantics = [#tpu.dimension_semantics<arbitrary>], iteration_bounds = array<i64: 1>, scalar_prefetch = 0 : i64, scratch_operands = 0 : i64, tpu.core_type = #tpu.core_type<tc>, window_params = [{transform_indices = @transform_0, window_bounds = array<i64: 128, 288>}, {pipeline_mode = #tpu.pipeline_mode<synchronous>, transform_indices = @transform_1, window_bounds = array<i64: 288, 128>}, {transform_indices = @transform_2, window_bounds = array<i64: 128, 128>}, {pipeline_mode = #tpu.pipeline_mode<synchronous>, transform_indices = @transform_3, window_bounds = array<i64: 1, 128>}, {pipeline_mode = #tpu.pipeline_mode<synchronous>, transform_indices = @transform_4, window_bounds = array<i64: 1, 128>}]} {
    %c0_i32 = arith.constant 0 : i32
    %0 = arith.cmpi eq, %arg0, %c0_i32 : i32
    %1 = arith.extui %0 : i1 to i32
    %c0_i32_0 = arith.constant 0 : i32
    %2 = arith.cmpi ne, %1, %c0_i32_0 : i32
    scf.if %2 {
      %cst_16 = arith.constant 0.000000e+00 : f32
      %18 = vector.broadcast %cst_16 : f32 to vector<1x128xf32>
      %c0_17 = arith.constant 0 : index
      %c0_18 = arith.constant 0 : index
      %19 = vector.load %arg4[%c0_17, %c0_18] : memref<1x128xf32, #tpu.memory_space<vmem>>, vector<1x128xf32>
      tpu.vector_store %arg4[%c0_17, %c0_18], %18 {strides = array<i32>} : memref<1x128xf32, #tpu.memory_space<vmem>>, vector<1x128xf32>,
      %cst_19 = arith.constant 0.000000e+00 : f32
      %20 = vector.broadcast %cst_19 : f32 to vector<1x128xf32>
      %c0_20 = arith.constant 0 : index
      %c0_21 = arith.constant 0 : index
      %21 = vector.load %arg5[%c0_20, %c0_21] : memref<1x128xf32, #tpu.memory_space<vmem>>, vector<1x128xf32>
      tpu.vector_store %arg5[%c0_20, %c0_21], %20 {strides = array<i32>} : memref<1x128xf32, #tpu.memory_space<vmem>>, vector<1x128xf32>,
    } else {
    }
    %c0 = arith.constant 0 : index
    %c0_1 = arith.constant 0 : index
    %3 = vector.load %arg1[%c0, %c0_1] : memref<128x288xbf16, #tpu.memory_space<vmem>>, vector<128x288xbf16>
    %c0_2 = arith.constant 0 : index
    %c0_3 = arith.constant 0 : index
    %4 = vector.load %arg2[%c0_2, %c0_3] : memref<288x128xbf16, #tpu.memory_space<vmem>>, vector<288x128xbf16>
    %cst = arith.constant dense<0.000000e+00> : vector<128x128xf32>
    %5 = tpu.matmul %3, %4, %cst {dimension_numbers = #tpu.dot_dimension_numbers<[1], [0], [0], [1], [0, 0, 1, 1], [], []>} : vector<128x288xbf16>, vector<288x128xbf16>, vector<128x128xf32> -> vector<128x128xf32>
    %c0_4 = arith.constant 0 : index
    %c0_5 = arith.constant 0 : index
    %6 = vector.load %arg3[%c0_4, %c0_5] : memref<128x128xf32, #tpu.memory_space<vmem>>, vector<128x128xf32>
    tpu.vector_store %arg3[%c0_4, %c0_5], %5 {strides = array<i32>} : memref<128x128xf32, #tpu.memory_space<vmem>>, vector<128x128xf32>,
    %c0_6 = arith.constant 0 : index
    %c0_7 = arith.constant 0 : index
    %7 = vector.load %arg4[%c0_6, %c0_7] : memref<1x128xf32, #tpu.memory_space<vmem>>, vector<1x128xf32>
    %cst_8 = arith.constant dense<0.000000e+00> : vector<128xf32>
    %8 = vector.multi_reduction <add>, %5, %cst_8 [0] : vector<128x128xf32> to vector<128xf32>
    %9 = vector.shape_cast %8 : vector<128xf32> to vector<1x128xf32>
    %10 = arith.addf %7, %9 : vector<1x128xf32>
    %c0_9 = arith.constant 0 : index
    %c0_10 = arith.constant 0 : index
    %11 = vector.load %arg4[%c0_9, %c0_10] : memref<1x128xf32, #tpu.memory_space<vmem>>, vector<1x128xf32>
    tpu.vector_store %arg4[%c0_9, %c0_10], %10 {strides = array<i32>} : memref<1x128xf32, #tpu.memory_space<vmem>>, vector<1x128xf32>,
    %c0_11 = arith.constant 0 : index
    %c0_12 = arith.constant 0 : index
    %12 = vector.load %arg5[%c0_11, %c0_12] : memref<1x128xf32, #tpu.memory_space<vmem>>, vector<1x128xf32>
    %13 = arith.mulf %5, %5 : vector<128x128xf32>
    %cst_13 = arith.constant dense<0.000000e+00> : vector<128xf32>
    %14 = vector.multi_reduction <add>, %13, %cst_13 [0] : vector<128x128xf32> to vector<128xf32>
    %15 = vector.shape_cast %14 : vector<128xf32> to vector<1x128xf32>
    %16 = arith.addf %12, %15 : vector<1x128xf32>
    %c0_14 = arith.constant 0 : index
    %c0_15 = arith.constant 0 : index
    %17 = vector.load %arg5[%c0_14, %c0_15] : memref<1x128xf32, #tpu.memory_space<vmem>>, vector<1x128xf32>
    tpu.vector_store %arg5[%c0_14, %c0_15], %16 {strides = array<i32>} : memref<1x128xf32, #tpu.memory_space<vmem>>, vector<1x128xf32>,
    return
  }
  func.func @transform_0(%arg0: i32) -> (i32, i32) {
    %c0_i32 = arith.constant 0 : i32
    %c0_i32_0 = arith.constant 0 : i32
    return %arg0, %c0_i32 : i32, i32
  }
  func.func @transform_1(%arg0: i32) -> (i32, i32) {
    %c0_i32 = arith.constant 0 : i32
    %c0_i32_0 = arith.constant 0 : i32
    %c0_i32_1 = arith.constant 0 : i32
    return %c0_i32, %c0_i32_0 : i32, i32
  }
  func.func @transform_2(%arg0: i32) -> (i32, i32) {
    %c0_i32 = arith.constant 0 : i32
    %c0_i32_0 = arith.constant 0 : i32
    return %arg0, %c0_i32 : i32, i32
  }
  func.func @transform_3(%arg0: i32) -> (i32, i32) {
    %c0_i32 = arith.constant 0 : i32
    %c0_i32_0 = arith.constant 0 : i32
    %c0_i32_1 = arith.constant 0 : i32
    return %c0_i32, %c0_i32_0 : i32, i32
  }
  func.func @transform_4(%arg0: i32) -> (i32, i32) {
    %c0_i32 = arith.constant 0 : i32
    %c0_i32_0 = arith.constant 0 : i32
    %c0_i32_1 = arith.constant 0 : i32
    return %c0_i32, %c0_i32_0 : i32, i32
  }
}

module attributes {stable_mosaic.version = 11 : i64} {
  func.func @kernel(%arg0: i32, %arg1: memref<128x128xf32, #tpu.memory_space<vmem>>, %arg2: memref<1x128xf32, #tpu.memory_space<vmem>>, %arg3: memref<1x128xf32, #tpu.memory_space<vmem>>, %arg4: memref<128x128xf32, #tpu.memory_space<vmem>>) attributes {dimension_semantics = [#tpu.dimension_semantics<parallel>], iteration_bounds = array<i64: 1>, scalar_prefetch = 0 : i64, scratch_operands = 0 : i64, tpu.core_type = #tpu.core_type<tc>, window_params = [{transform_indices = @transform_0, window_bounds = array<i64: 128, 128>}, {pipeline_mode = #tpu.pipeline_mode<synchronous>, transform_indices = @transform_1, window_bounds = array<i64: 1, 128>}, {pipeline_mode = #tpu.pipeline_mode<synchronous>, transform_indices = @transform_2, window_bounds = array<i64: 1, 128>}, {transform_indices = @transform_3, window_bounds = array<i64: 128, 128>}]} {
    %c0 = arith.constant 0 : index
    %c0_0 = arith.constant 0 : index
    %0 = vector.load %arg1[%c0, %c0_0] : memref<128x128xf32, #tpu.memory_space<vmem>>, vector<128x128xf32>
    %c0_1 = arith.constant 0 : index
    %c0_2 = arith.constant 0 : index
    %1 = vector.load %arg2[%c0_1, %c0_2] : memref<1x128xf32, #tpu.memory_space<vmem>>, vector<1x128xf32>
    %2 = vector.broadcast %1 : vector<1x128xf32> to vector<128x128xf32>
    %3 = arith.mulf %0, %2 : vector<128x128xf32>
    %c0_3 = arith.constant 0 : index
    %c0_4 = arith.constant 0 : index
    %4 = vector.load %arg3[%c0_3, %c0_4] : memref<1x128xf32, #tpu.memory_space<vmem>>, vector<1x128xf32>
    %5 = vector.broadcast %4 : vector<1x128xf32> to vector<128x128xf32>
    %6 = arith.addf %3, %5 : vector<128x128xf32>
    %cst = arith.constant 0.000000e+00 : f32
    %7 = vector.broadcast %cst : f32 to vector<128x128xf32>
    %8 = arith.maximumf %6, %7 : vector<128x128xf32>
    %c0_5 = arith.constant 0 : index
    %c0_6 = arith.constant 0 : index
    %9 = vector.load %arg4[%c0_5, %c0_6] : memref<128x128xf32, #tpu.memory_space<vmem>>, vector<128x128xf32>
    tpu.vector_store %arg4[%c0_5, %c0_6], %8 {strides = array<i32>} : memref<128x128xf32, #tpu.memory_space<vmem>>, vector<128x128xf32>,
    return
  }
  func.func @transform_0(%arg0: i32) -> (i32, i32) {
    %c0_i32 = arith.constant 0 : i32
    %c0_i32_0 = arith.constant 0 : i32
    return %arg0, %c0_i32 : i32, i32
  }
  func.func @transform_1(%arg0: i32) -> (i32, i32) {
    %c0_i32 = arith.constant 0 : i32
    %c0_i32_0 = arith.constant 0 : i32
    %c0_i32_1 = arith.constant 0 : i32
    return %c0_i32, %c0_i32_0 : i32, i32
  }
  func.func @transform_2(%arg0: i32) -> (i32, i32) {
    %c0_i32 = arith.constant 0 : i32
    %c0_i32_0 = arith.constant 0 : i32
    %c0_i32_1 = arith.constant 0 : i32
    return %c0_i32, %c0_i32_0 : i32, i32
  }
  func.func @transform_3(%arg0: i32) -> (i32, i32) {
    %c0_i32 = arith.constant 0 : i32
    %c0_i32_0 = arith.constant 0 : i32
    return %arg0, %c0_i32 : i32, i32
  }
}

module attributes {stable_mosaic.version = 11 : i64} {
  func.func @_matmul_stats_kernel(%arg0: i32, %arg1: memref<128x128xbf16, #tpu.memory_space<vmem>>, %arg2: memref<128x128xbf16, #tpu.memory_space<vmem>>, %arg3: memref<128x128xf32, #tpu.memory_space<vmem>>, %arg4: memref<1x128xf32, #tpu.memory_space<vmem>>, %arg5: memref<1x128xf32, #tpu.memory_space<vmem>>) attributes {dimension_semantics = [#tpu.dimension_semantics<arbitrary>], iteration_bounds = array<i64: 1>, scalar_prefetch = 0 : i64, scratch_operands = 0 : i64, tpu.core_type = #tpu.core_type<tc>, window_params = [{transform_indices = @transform_0, window_bounds = array<i64: 128, 128>}, {pipeline_mode = #tpu.pipeline_mode<synchronous>, transform_indices = @transform_1, window_bounds = array<i64: 128, 128>}, {transform_indices = @transform_2, window_bounds = array<i64: 128, 128>}, {pipeline_mode = #tpu.pipeline_mode<synchronous>, transform_indices = @transform_3, window_bounds = array<i64: 1, 128>}, {pipeline_mode = #tpu.pipeline_mode<synchronous>, transform_indices = @transform_4, window_bounds = array<i64: 1, 128>}]} {
    %c0_i32 = arith.constant 0 : i32
    %0 = arith.cmpi eq, %arg0, %c0_i32 : i32
    %1 = arith.extui %0 : i1 to i32
    %c0_i32_0 = arith.constant 0 : i32
    %2 = arith.cmpi ne, %1, %c0_i32_0 : i32
    scf.if %2 {
      %cst_16 = arith.constant 0.000000e+00 : f32
      %18 = vector.broadcast %cst_16 : f32 to vector<1x128xf32>
      %c0_17 = arith.constant 0 : index
      %c0_18 = arith.constant 0 : index
      %19 = vector.load %arg4[%c0_17, %c0_18] : memref<1x128xf32, #tpu.memory_space<vmem>>, vector<1x128xf32>
      tpu.vector_store %arg4[%c0_17, %c0_18], %18 {strides = array<i32>} : memref<1x128xf32, #tpu.memory_space<vmem>>, vector<1x128xf32>,
      %cst_19 = arith.constant 0.000000e+00 : f32
      %20 = vector.broadcast %cst_19 : f32 to vector<1x128xf32>
      %c0_20 = arith.constant 0 : index
      %c0_21 = arith.constant 0 : index
      %21 = vector.load %arg5[%c0_20, %c0_21] : memref<1x128xf32, #tpu.memory_space<vmem>>, vector<1x128xf32>
      tpu.vector_store %arg5[%c0_20, %c0_21], %20 {strides = array<i32>} : memref<1x128xf32, #tpu.memory_space<vmem>>, vector<1x128xf32>,
    } else {
    }
    %c0 = arith.constant 0 : index
    %c0_1 = arith.constant 0 : index
    %3 = vector.load %arg1[%c0, %c0_1] : memref<128x128xbf16, #tpu.memory_space<vmem>>, vector<128x128xbf16>
    %c0_2 = arith.constant 0 : index
    %c0_3 = arith.constant 0 : index
    %4 = vector.load %arg2[%c0_2, %c0_3] : memref<128x128xbf16, #tpu.memory_space<vmem>>, vector<128x128xbf16>
    %cst = arith.constant dense<0.000000e+00> : vector<128x128xf32>
    %5 = tpu.matmul %3, %4, %cst {dimension_numbers = #tpu.dot_dimension_numbers<[1], [0], [0], [1], [0, 0, 1, 1], [], []>} : vector<128x128xbf16>, vector<128x128xbf16>, vector<128x128xf32> -> vector<128x128xf32>
    %c0_4 = arith.constant 0 : index
    %c0_5 = arith.constant 0 : index
    %6 = vector.load %arg3[%c0_4, %c0_5] : memref<128x128xf32, #tpu.memory_space<vmem>>, vector<128x128xf32>
    tpu.vector_store %arg3[%c0_4, %c0_5], %5 {strides = array<i32>} : memref<128x128xf32, #tpu.memory_space<vmem>>, vector<128x128xf32>,
    %c0_6 = arith.constant 0 : index
    %c0_7 = arith.constant 0 : index
    %7 = vector.load %arg4[%c0_6, %c0_7] : memref<1x128xf32, #tpu.memory_space<vmem>>, vector<1x128xf32>
    %cst_8 = arith.constant dense<0.000000e+00> : vector<128xf32>
    %8 = vector.multi_reduction <add>, %5, %cst_8 [0] : vector<128x128xf32> to vector<128xf32>
    %9 = vector.shape_cast %8 : vector<128xf32> to vector<1x128xf32>
    %10 = arith.addf %7, %9 : vector<1x128xf32>
    %c0_9 = arith.constant 0 : index
    %c0_10 = arith.constant 0 : index
    %11 = vector.load %arg4[%c0_9, %c0_10] : memref<1x128xf32, #tpu.memory_space<vmem>>, vector<1x128xf32>
    tpu.vector_store %arg4[%c0_9, %c0_10], %10 {strides = array<i32>} : memref<1x128xf32, #tpu.memory_space<vmem>>, vector<1x128xf32>,
    %c0_11 = arith.constant 0 : index
    %c0_12 = arith.constant 0 : index
    %12 = vector.load %arg5[%c0_11, %c0_12] : memref<1x128xf32, #tpu.memory_space<vmem>>, vector<1x128xf32>
    %13 = arith.mulf %5, %5 : vector<128x128xf32>
    %cst_13 = arith.constant dense<0.000000e+00> : vector<128xf32>
    %14 = vector.multi_reduction <add>, %13, %cst_13 [0] : vector<128x128xf32> to vector<128xf32>
    %15 = vector.shape_cast %14 : vector<128xf32> to vector<1x128xf32>
    %16 = arith.addf %12, %15 : vector<1x128xf32>
    %c0_14 = arith.constant 0 : index
    %c0_15 = arith.constant 0 : index
    %17 = vector.load %arg5[%c0_14, %c0_15] : memref<1x128xf32, #tpu.memory_space<vmem>>, vector<1x128xf32>
    tpu.vector_store %arg5[%c0_14, %c0_15], %16 {strides = array<i32>} : memref<1x128xf32, #tpu.memory_space<vmem>>, vector<1x128xf32>,
    return
  }
  func.func @transform_0(%arg0: i32) -> (i32, i32) {
    %c0_i32 = arith.constant 0 : i32
    %c0_i32_0 = arith.constant 0 : i32
    return %arg0, %c0_i32 : i32, i32
  }
  func.func @transform_1(%arg0: i32) -> (i32, i32) {
    %c0_i32 = arith.constant 0 : i32
    %c0_i32_0 = arith.constant 0 : i32
    %c0_i32_1 = arith.constant 0 : i32
    return %c0_i32, %c0_i32_0 : i32, i32
  }
  func.func @transform_2(%arg0: i32) -> (i32, i32) {
    %c0_i32 = arith.constant 0 : i32
    %c0_i32_0 = arith.constant 0 : i32
    return %arg0, %c0_i32 : i32, i32
  }
  func.func @transform_3(%arg0: i32) -> (i32, i32) {
    %c0_i32 = arith.constant 0 : i32
    %c0_i32_0 = arith.constant 0 : i32
    %c0_i32_1 = arith.constant 0 : i32
    return %c0_i32, %c0_i32_0 : i32, i32
  }
  func.func @transform_4(%arg0: i32) -> (i32, i32) {
    %c0_i32 = arith.constant 0 : i32
    %c0_i32_0 = arith.constant 0 : i32
    %c0_i32_1 = arith.constant 0 : i32
    return %c0_i32, %c0_i32_0 : i32, i32
  }
}

module attributes {stable_mosaic.version = 11 : i64} {
  func.func @_matmul_bias_kernel(%arg0: i32, %arg1: memref<512x64xbf16, #tpu.memory_space<vmem>>, %arg2: memref<64x128xbf16, #tpu.memory_space<vmem>>, %arg3: memref<1x128xf32, #tpu.memory_space<vmem>>, %arg4: memref<512x128xf32, #tpu.memory_space<vmem>>) attributes {dimension_semantics = [#tpu.dimension_semantics<parallel>], iteration_bounds = array<i64: 1>, scalar_prefetch = 0 : i64, scratch_operands = 0 : i64, tpu.core_type = #tpu.core_type<tc>, window_params = [{transform_indices = @transform_0, window_bounds = array<i64: 512, 64>}, {pipeline_mode = #tpu.pipeline_mode<synchronous>, transform_indices = @transform_1, window_bounds = array<i64: 64, 128>}, {pipeline_mode = #tpu.pipeline_mode<synchronous>, transform_indices = @transform_2, window_bounds = array<i64: 1, 128>}, {transform_indices = @transform_3, window_bounds = array<i64: 512, 128>}]} {
    %c0 = arith.constant 0 : index
    %c0_0 = arith.constant 0 : index
    %0 = vector.load %arg1[%c0, %c0_0] : memref<512x64xbf16, #tpu.memory_space<vmem>>, vector<512x64xbf16>
    %c0_1 = arith.constant 0 : index
    %c0_2 = arith.constant 0 : index
    %1 = vector.load %arg2[%c0_1, %c0_2] : memref<64x128xbf16, #tpu.memory_space<vmem>>, vector<64x128xbf16>
    %cst = arith.constant dense<0.000000e+00> : vector<512x128xf32>
    %2 = tpu.matmul %0, %1, %cst {dimension_numbers = #tpu.dot_dimension_numbers<[1], [0], [0], [1], [0, 0, 1, 1], [], []>} : vector<512x64xbf16>, vector<64x128xbf16>, vector<512x128xf32> -> vector<512x128xf32>
    %c0_3 = arith.constant 0 : index
    %c0_4 = arith.constant 0 : index
    %3 = vector.load %arg3[%c0_3, %c0_4] : memref<1x128xf32, #tpu.memory_space<vmem>>, vector<1x128xf32>
    %4 = vector.broadcast %3 : vector<1x128xf32> to vector<512x128xf32>
    %5 = arith.addf %2, %4 : vector<512x128xf32>
    %c0_5 = arith.constant 0 : index
    %c0_6 = arith.constant 0 : index
    %6 = vector.load %arg4[%c0_5, %c0_6] : memref<512x128xf32, #tpu.memory_space<vmem>>, vector<512x128xf32>
    tpu.vector_store %arg4[%c0_5, %c0_6], %5 {strides = array<i32>} : memref<512x128xf32, #tpu.memory_space<vmem>>, vector<512x128xf32>,
    return
  }
  func.func @transform_0(%arg0: i32) -> (i32, i32) {
    %c0_i32 = arith.constant 0 : i32
    %c0_i32_0 = arith.constant 0 : i32
    return %arg0, %c0_i32 : i32, i32
  }
  func.func @transform_1(%arg0: i32) -> (i32, i32) {
    %c0_i32 = arith.constant 0 : i32
    %c0_i32_0 = arith.constant 0 : i32
    %c0_i32_1 = arith.constant 0 : i32
    return %c0_i32, %c0_i32_0 : i32, i32
  }
  func.func @transform_2(%arg0: i32) -> (i32, i32) {
    %c0_i32 = arith.constant 0 : i32
    %c0_i32_0 = arith.constant 0 : i32
    %c0_i32_1 = arith.constant 0 : i32
    return %c0_i32, %c0_i32_0 : i32, i32
  }
  func.func @transform_3(%arg0: i32) -> (i32, i32) {
    %c0_i32 = arith.constant 0 : i32
    %c0_i32_0 = arith.constant 0 : i32
    return %arg0, %c0_i32 : i32, i32
  }
}

</mosaic_0001>

<bundles_post_ra>
// kernel: vqvae_decoder_forward.22
= control target key start
LH: loop header
LB: loop body
LE: loop exit
PB: predicated region body
PF: predicated region fallthrough
CT: control target
= control target key end

     0   :  { %s344_s0 = inlined_call_operand.vmem [shape: f32[128,128], index: 0, kind: input, shape index: {}]   ;;  %s345_s1 = inlined_call_operand.vmem [shape: f32[1,128], index: 1, kind: input, shape index: {}]   ;;  %s346_s2 = inlined_call_operand.vmem [shape: f32[1,128], index: 2, kind: input, shape index: {}]   ;;  %s347_s3 = inlined_call_operand.vmem [shape: f32[128,128], index: 3, kind: input, shape index: {}]   ;;  %s348_s4 = inlined_call_operand.vmem [shape: f32[128,128], index: 4, kind: output, shape index: {}]  }
   0x1   :  { %v17_v0 = vld [vmem:[%s344_s0] sm:$0xff]  ;;  %v18_v4 = vld [vmem:[%s344_s0 + $0x8] sm:$0xff]  ;;  %v19_v7 = vld [vmem:[%s344_s0 + $0x10] sm:$0xff] }
   0x2   :  { %v164_v1 = vld [vmem:[%s345_s1] ss:$0 sm:$0xff]  ;;  %v20_v8 = vld [vmem:[%s344_s0 + $0x18] sm:$0xff]  ;;  %v80_v10 = vld [vmem:[%s347_s3 + $0x8] sm:$0xff] }
   0x3   :  { %v169_v2 = vld [vmem:[%s346_s2] ss:$0 sm:$0xff]  ;;  %v40_v3 = vmul.f32 %v164_v1, %v17_v0  ;;  %v41_v6 = vmul.f32 %v164_v1, %v18_v4  ;;  %v42_v11 = vmul.f32 %v164_v1, %v19_v7  ;;  %v81_v12 = vld [vmem:[%s347_s3 + $0x10] sm:$0xff]  ;;  %v43_v13 = vmul.f32 %v164_v1, %v20_v8  ;;  %v82_v16 = vld [vmem:[%s347_s3 + $0x18] sm:$0xff] }
   0x4   :  { %v79_v5 = vld [vmem:[%s347_s3] sm:$0xff]  ;;  %v22_v18 = vld [vmem:[%s344_s0 + $0x28] sm:$0xff]  ;;  %v23_v19 = vld [vmem:[%s344_s0 + $0x30] sm:$0xff] }
   0x5   :  { %v63_v9 = vadd.f32 %v169_v2, %v40_v3  ;;  %v21_v14 = vld [vmem:[%s344_s0 + $0x20] sm:$0xff]  ;;  %v64_v15 = vadd.f32 %v169_v2, %v41_v6  ;;  %v65_v21 = vadd.f32 %v169_v2, %v42_v11  ;;  %v66_v22 = vadd.f32 %v169_v2, %v43_v13  ;;  %v24_v25 = vld [vmem:[%s344_s0 + $0x38] sm:$0xff]  ;;  %v84_v28 = vld [vmem:[%s347_s3 + $0x28] sm:$0xff] }
   0x6   :  { %v44_v17 = vmul.f32 %v164_v1, %v21_v14  ;;  %v83_v23 = vld [vmem:[%s347_s3 + $0x20] sm:$0xff]  ;;  %v45_v24 = vmul.f32 %v164_v1, %v22_v18  ;;  %v46_v29 = vmul.f32 %v164_v1, %v23_v19  ;;  %v47_v30 = vmul.f32 %v164_v1, %v24_v25  ;;  %v26_v32 = vld [vmem:[%s344_s0 + $0x48] sm:$0xff]  ;;  %v85_v36 = vld [vmem:[%s347_s3 + $0x30] sm:$0xff] }
   0x7   :  { %v95_v20 = vadd.f32 %v79_v5, %v63_v9  ;;  %v96_v26 = vadd.f32 %v80_v10, %v64_v15  ;;  %v25_v31 = vld [vmem:[%s344_s0 + $0x40] sm:$0xff]  ;;  %v97_v33 = vadd.f32 %v81_v12, %v65_v21  ;;  %v98_v34 = vadd.f32 %v82_v16, %v66_v22  ;;  %v86_v37 = vld [vmem:[%s347_s3 + $0x38] sm:$0xff]  ;;  %v27_v39 = vld [vmem:[%s344_s0 + $0x50] sm:$0xff] }
   0x8   :  { %v67_v27 = vadd.f32 %v169_v2, %v44_v17  ;;  %v68_v35 = vadd.f32 %v169_v2, %v45_v24  ;;  %v48_v38 = vmul.f32 %v164_v1, %v25_v31  ;;  %v69_v41 = vadd.f32 %v169_v2, %v46_v29  ;;  %v87_v43 = vld [vmem:[%s347_s3 + $0x40] sm:$0xff]  ;;  %v28_v45 = vld [vmem:[%s344_s0 + $0x58] sm:$0xff]  ;;  %v88_v49 = vld [vmem:[%s347_s3 + $0x48] sm:$0xff] }
   0x9   :  { %111 = vst [vmem:[%s348_s4] sm:$0xff] %v95_v20  ;;  %112 = vst [vmem:[%s348_s4 + $0x8] sm:$0xff] %v96_v26  ;;  %v70_v42 = vadd.f32 %v169_v2, %v47_v30  ;;  %v49_v44 = vmul.f32 %v164_v1, %v26_v32  ;;  %v29_v46 = vld [vmem:[%s344_s0 + $0x60] sm:$0xff]  ;;  %v50_v50 = vmul.f32 %v164_v1, %v27_v39  ;;  %v89_v51 = vld [vmem:[%s347_s3 + $0x50] sm:$0xff] }
   0xa   :  { %v99_v40 = vadd.f32 %v83_v23, %v67_v27  ;;  %113 = vst [vmem:[%s348_s4 + $0x10] sm:$0xff] %v97_v33  ;;  %114 = vst [vmem:[%s348_s4 + $0x18] sm:$0xff] %v98_v34  ;;  %v100_v47 = vadd.f32 %v84_v28, %v68_v35  ;;  %v71_v48 = vadd.f32 %v169_v2, %v48_v38  ;;  %v30_v53 = vld [vmem:[%s344_s0 + $0x68] sm:$0xff]  ;;  %v90_v57 = vld [vmem:[%s347_s3 + $0x58] sm:$0xff] }
   0xb   :  { %v51_v52 = vmul.f32 %v164_v1, %v28_v45  ;;  %v101_v54 = vadd.f32 %v85_v36, %v69_v41  ;;  %v102_v55 = vadd.f32 %v86_v37, %v70_v42  ;;  %v72_v56 = vadd.f32 %v169_v2, %v49_v44  ;;  %v31_v59 = vld [vmem:[%s344_s0 + $0x70] sm:$0xff]  ;;  %v32_v60 = vld [vmem:[%s344_s0 + $0x78] sm:$0xff]  ;;  %v91_v0 = vld [vmem:[%s347_s3 + $0x60] sm:$0xff] }
   0xc   :  { %115 = vst [vmem:[%s348_s4 + $0x20] sm:$0xff] %v99_v40  ;;  %v52_v58 = vmul.f32 %v164_v1, %v29_v46  ;;  %116 = vst [vmem:[%s348_s4 + $0x28] sm:$0xff] %v100_v47  ;;  %v103_v61 = vadd.f32 %v87_v43, %v71_v48  ;;  %v73_v62 = vadd.f32 %v169_v2, %v50_v50  ;;  %v92_v6 = vld [vmem:[%s347_s3 + $0x68] sm:$0xff]  ;;  %v93_v12 = vld [vmem:[%s347_s3 + $0x70] sm:$0xff] }
   0xd   :  { %v74_v63 = vadd.f32 %v169_v2, %v51_v52  ;;  %v53_v3 = vmul.f32 %v164_v1, %v30_v53  ;;  %117 = vst [vmem:[%s348_s4 + $0x30] sm:$0xff] %v101_v54  ;;  %118 = vst [vmem:[%s348_s4 + $0x38] sm:$0xff] %v102_v55  ;;  %v104_v4 = vadd.f32 %v88_v49, %v72_v56  ;;  %v94_v13 = vld [vmem:[%s347_s3 + $0x78] sm:$0xff] }
   0xe   :  { %v75_v5 = vadd.f32 %v169_v2, %v52_v58  ;;  %v54_v7 = vmul.f32 %v164_v1, %v31_v59  ;;  %v55_v8 = vmul.f32 %v164_v1, %v32_v60  ;;  %119 = vst [vmem:[%s348_s4 + $0x40] sm:$0xff] %v103_v61  ;;  %v105_v9 = vadd.f32 %v89_v51, %v73_v62 }
   0xf   :  { %v106_v10 = vadd.f32 %v90_v57, %v74_v63  ;;  %v76_v11 = vadd.f32 %v169_v2, %v53_v3  ;;  %120 = vst [vmem:[%s348_s4 + $0x48] sm:$0xff] %v104_v4 }
  0x10   :  { %v107_v1 = vadd.f32 %v91_v0, %v75_v5  ;;  %v77_v14 = vadd.f32 %v169_v2, %v54_v7  ;;  %v78_v15 = vadd.f32 %v169_v2, %v55_v8  ;;  %121 = vst [vmem:[%s348_s4 + $0x50] sm:$0xff] %v105_v9 }
  0x11   :  { %122 = vst [vmem:[%s348_s4 + $0x58] sm:$0xff] %v106_v10  ;;  %v108_v16 = vadd.f32 %v92_v6, %v76_v11 }
  0x12   :  { %123 = vst [vmem:[%s348_s4 + $0x60] sm:$0xff] %v107_v1  ;;  %v109_v17 = vadd.f32 %v93_v12, %v77_v14  ;;  %v110_v18 = vadd.f32 %v94_v13, %v78_v15 }
  0x13   :  { %124 = vst [vmem:[%s348_s4 + $0x68] sm:$0xff] %v108_v16 }
  0x14   :  { %125 = vst [vmem:[%s348_s4 + $0x70] sm:$0xff] %v109_v17  ;;  %126 = vst [vmem:[%s348_s4 + $0x78] sm:$0xff] %v110_v18 }

// kernel: vqvae_decoder_forward.21
= control target key start
LH: loop header
LB: loop body
LE: loop exit
PB: predicated region body
PF: predicated region fallthrough
CT: control target
= control target key end

     0   :  { %s764_s3 = inlined_call_operand.vmem [shape: bf16[128,128], index: 3, kind: input, shape index: {}]   ;;  %s765_s0 = inlined_call_operand.vmem [shape: f32[128,128], index: 0, kind: input, shape index: {}]   ;;  %s766_s1 = inlined_call_operand.vmem [shape: f32[1,128], index: 1, kind: input, shape index: {}]   ;;  %s767_s2 = inlined_call_operand.vmem [shape: f32[1,128], index: 2, kind: input, shape index: {}]   ;;  %s768_s5 = inlined_call_operand.vmem [shape: f32[1,128], index: 5, kind: output, shape index: {1}]   ;;  %s769_s6 = inlined_call_operand.vmem [shape: f32[1,128], index: 6, kind: output, shape index: {2}]   ;;  %s770_s4 = inlined_call_operand.vmem [shape: f32[128,128], index: 4, kind: output, shape index: {0}]  }
   0x1   :  { %v540_v0 = vld [vmem:[%s764_s3] sm:$0xff]   ;;  %v541_v1 = vld [vmem:[%s764_s3 + $0x8] sm:$0xff]   ;;  %v542_v2 = vld [vmem:[%s764_s3 + $0x10] sm:$0xff]  }
   0x2   :  { %491 = vmatprep.subr.bf16.mxu0 %v540_v0  ;;  %523 = vmatprep.subr.bf16.mxu1 %v540_v0  ;;  %v543_v3 = vld [vmem:[%s764_s3 + $0x18] sm:$0xff]   ;;  %v27_v4 = vld [vmem:[%s765_s0] sm:$0xff]  ;;  %v28_v5 = vld [vmem:[%s765_s0 + $0x8] sm:$0xff] }
   0x3   :  { %492 = vmatpush3.bf16.msra.mxu0 %v540_v0  ;;  %531 = vmatpush3.bf16.msra.mxu1 %v540_v0  ;;  %v605_v6 = vld [vmem:[%s766_s1] ss:$0 sm:$0xff]  ;;  %v36_v16 = vld [vmem:[%s765_s0 + $0x48] sm:$0xff]  ;;  %v29_v18 = vld [vmem:[%s765_s0 + $0x10] sm:$0xff] }
   0x4   :  { %493 = vmatprep.subr.bf16.mxu0 %v541_v1  ;;  %524 = vmatprep.subr.bf16.mxu1 %v541_v1  ;;  %v50_v7 = vmul.f32 %v605_v6, %v27_v4  ;;  %v51_v8 = vmul.f32 %v605_v6, %v28_v5  ;;  %v612_v9 = vld [vmem:[%s767_s2] ss:$0 sm:$0xff]  ;;  %v545_v17 = vld [vmem:[%s764_s3 + $0x28] sm:$0xff]   ;;  %v30_v19 = vld [vmem:[%s765_s0 + $0x18] sm:$0xff]  ;;  %v59_v26 = vmul.f32 %v605_v6, %v36_v16 }
   0x5   :  { %v544_v12 = vld [vmem:[%s764_s3 + $0x20] sm:$0xff]   ;;  %v37_v23 = vld [vmem:[%s765_s0 + $0x50] sm:$0xff]  ;;  %v38_v24 = vld [vmem:[%s765_s0 + $0x58] sm:$0xff]  ;;  %v52_v29 = vmul.f32 %v605_v6, %v29_v18  ;;  %v53_v30 = vmul.f32 %v605_v6, %v30_v19  ;;  %v548_v19 = vmov 0.0  }
   0x6   :  { %v73_v10 = vadd.f32 %v612_v9, %v50_v7  ;;  %v74_v11 = vadd.f32 %v612_v9, %v51_v8  ;;  %v35_v13 = vld [vmem:[%s765_s0 + $0x40] sm:$0xff]  ;;  %v32_v25 = vld [vmem:[%s765_s0 + $0x28] sm:$0xff]  ;;  %v82_v33 = vadd.f32 %v612_v9, %v59_v26  ;;  %v60_v34 = vmul.f32 %v605_v6, %v37_v23  ;;  %v546_v40 = vld [vmem:[%s764_s3 + $0x30] sm:$0xff]   ;;  %25 = vst [vmem:[%s768_s5] sm:$0x1] %v548_v19 }
   0x7   :  { %494 = vmatpush3.bf16.msra.mxu0 %v541_v1  ;;  %532 = vmatpush3.bf16.msra.mxu1 %v541_v1  ;;  %v31_v21 = vld [vmem:[%s765_s0 + $0x20] sm:$0xff]  ;;  %v58_v22 = vmul.f32 %v605_v6, %v35_v13  ;;  %v40_v28 = vld [vmem:[%s765_s0 + $0x68] sm:$0xff]  ;;  %v61_v35 = vmul.f32 %v605_v6, %v38_v24  ;;  %v55_v36 = vmul.f32 %v605_v6, %v32_v25  ;;  %v33_v45 = vld [vmem:[%s765_s0 + $0x30] sm:$0xff] }
   0x8   :  { %495 = vmatprep.subr.bf16.mxu0 %v542_v2  ;;  %525 = vmatprep.subr.bf16.mxu1 %v542_v2  ;;  %v89_v14 = vmax.f32 %v73_v10, 0.0  ;;  %v90_v15 = vmax.f32 %v74_v11, 0.0  ;;  %v39_v27 = vld [vmem:[%s765_s0 + $0x60] sm:$0xff]  ;;  %v54_v32 = vmul.f32 %v605_v6, %v31_v21  ;;  %v63_v39 = vmul.f32 %v605_v6, %v40_v28  ;;  %v34_v46 = vld [vmem:[%s765_s0 + $0x38] sm:$0xff]  ;;  %v41_v53 = vld [vmem:[%s765_s0 + $0x70] sm:$0xff]  ;;  %26 = vst [vmem:[%s769_s6] sm:$0x1] %v548_v19 }
   0x9   :  { %v81_v31 = vadd.f32 %v612_v9, %v58_v22  ;;  %v62_v38 = vmul.f32 %v605_v6, %v39_v27  ;;  %v98_v41 = vmax.f32 %v82_v33, 0.0  ;;  %v75_v42 = vadd.f32 %v612_v9, %v52_v29  ;;  %v42_v54 = vld [vmem:[%s765_s0 + $0x78] sm:$0xff] }
   0xa   :  { %v204_v20 = vpack.c.bf16 %v90_v15, %v89_v14  ;;  %v76_v43 = vadd.f32 %v612_v9, %v53_v30  ;;  %v77_v44 = vadd.f32 %v612_v9, %v54_v32  ;;  %v83_v48 = vadd.f32 %v612_v9, %v60_v34  ;;  %v547_v55 = vld [vmem:[%s764_s3 + $0x38] sm:$0xff]  }
   0xb   :  { %496 = vmatpush3.bf16.msra.mxu0 %v542_v2  ;;  %533 = vmatpush3.bf16.msra.mxu1 %v542_v2  ;;  %v97_v37 = vmax.f32 %v81_v31, 0.0  ;;  %v84_v49 = vadd.f32 %v612_v9, %v61_v35  ;;  %v78_v50 = vadd.f32 %v612_v9, %v55_v36  ;;  %v85_v51 = vadd.f32 %v612_v9, %v62_v38 }
   0xc   :  { %497 = vmatprep.subr.bf16.mxu0 %v543_v3  ;;  %526 = vmatprep.subr.bf16.mxu1 %v543_v3  ;;  %v86_v52 = vadd.f32 %v612_v9, %v63_v39  ;;  %v91_v56 = vmax.f32 %v75_v42, 0.0  ;;  %v92_v57 = vmax.f32 %v76_v43, 0.0  ;;  %v56_v58 = vmul.f32 %v605_v6, %v33_v45 }
   0xd   :  { %507 = vmatprep.mubr.bf16.mxu0 %v204_v20  ;;  %v208_v47 = vpack.c.bf16 %v98_v41, %v97_v37  ;;  %v57_v59 = vmul.f32 %v605_v6, %v34_v46  ;;  %v99_v60 = vmax.f32 %v83_v48, 0.0  ;;  %v100_v61 = vmax.f32 %v84_v49, 0.0 }
   0xe   :  { %v64_v62 = vmul.f32 %v605_v6, %v41_v53  ;;  %v65_v63 = vmul.f32 %v605_v6, %v42_v54  ;;  %v93_v0 = vmax.f32 %v77_v44, 0.0  ;;  %v94_v1 = vmax.f32 %v78_v50, 0.0 }
   0xf   :  { %498 = vmatpush3.bf16.msra.mxu0 %v543_v3  ;;  %534 = vmatpush3.bf16.msra.mxu1 %v543_v3  ;;  %v101_v2 = vmax.f32 %v85_v51, 0.0  ;;  %v102_v3 = vmax.f32 %v86_v52, 0.0  ;;  %v205_v4 = vpack.c.bf16 %v92_v57, %v91_v56  ;;  %v79_v5 = vadd.f32 %v612_v9, %v56_v58 }
  0x10   :  { %499 = vmatprep.subr.bf16.mxu0 %v544_v12  ;;  %527 = vmatprep.subr.bf16.mxu1 %v544_v12  ;;  %v80_v7 = vadd.f32 %v612_v9, %v57_v59  ;;  %v209_v8 = vpack.c.bf16 %v100_v61, %v99_v60  ;;  %v87_v10 = vadd.f32 %v612_v9, %v64_v62 }
  0x11   :  { %515 = vmatprep.mubr.bf16.mxu1 %v208_v47  ;;  %v88_v11 = vadd.f32 %v612_v9, %v65_v63  ;;  %v206_v6 = vpack.c.bf16 %v94_v1, %v93_v0  ;;  %v95_v13 = vmax.f32 %v79_v5, 0.0 }
  0x12   :  { %v96_v14 = vmax.f32 %v80_v7, 0.0  ;;  %v103_v15 = vmax.f32 %v87_v10, 0.0 }
  0x13   :  { %500 = vmatpush3.bf16.msra.mxu0 %v544_v12  ;;  %535 = vmatpush3.bf16.msra.mxu1 %v544_v12  ;;  %v210_v12 = vpack.c.bf16 %v102_v3, %v101_v2  ;;  %v104_v16 = vmax.f32 %v88_v11, 0.0 }
  0x14   :  { %501 = vmatprep.subr.bf16.mxu0 %v545_v17  ;;  %528 = vmatprep.subr.bf16.mxu1 %v545_v17 }
  0x15   :  { %v211_v18 = vpack.c.bf16 %v104_v16, %v103_v15 }
  0x17   :  { %502 = vmatpush3.bf16.msra.mxu0 %v545_v17  ;;  %536 = vmatpush3.bf16.msra.mxu1 %v545_v17  ;;  %v207_v17 = vpack.c.bf16 %v96_v14, %v95_v13 }
  0x18   :  { %503 = vmatprep.subr.bf16.mxu0 %v546_v40  ;;  %529 = vmatprep.subr.bf16.mxu1 %v546_v40 }
  0x1b   :  { %504 = vmatpush3.bf16.msra.mxu0 %v546_v40  ;;  %537 = vmatpush3.bf16.msra.mxu1 %v546_v40 }
  0x1c   :  { %505 = vmatprep.subr.bf16.mxu0 %v547_v55  ;;  %530 = vmatprep.subr.bf16.mxu1 %v547_v55 }
  0x1f   :  { %506 = vmatpush3.bf16.msra.mxu0 %v547_v55  ;;  %538 = vmatpush3.bf16.msra.mxu1 %v547_v55 }
  0x22   :  { %508 = vmatmul.mubr.bf16.vlgmr.msra.gmra.mrb[0].mxu0 %v205_v4  ;;  %516 = vmatmul.mubr.bf16.vlgmr.msra.gmra.mrb[0].mxu1 %v209_v8 }
  0x23   :  { %511 = vmatprep.mubr.bf16.mxu0 %v206_v6  ;;  %519 = vmatprep.mubr.bf16.mxu1 %v210_v12 }
  0x2a   :  { %512 = vmatmul.mubr.bf16.gmra.mrb[4].mxu0 %v207_v17  ;;  %520 = vmatmul.mubr.bf16.gmra.mrb[4].mxu1 %v211_v18 }
  0xf5   :  { %v509_v9 = vpop.f32.mrb[0].mxu0  ;;  %v517_v20 = vpop.f32.mrb[0].mxu1 }
  0xf6   :  { %375 = vst [vmem:[%s770_s4 + $0x10] sm:$0xff] %v509_v9  ;;  %v310_v21 = vpop.f32.mrb[1].mxu0  ;;  %383 = vst [vmem:[%s770_s4 + $0x50] sm:$0xff] %v517_v20  ;;  %v342_v22 = vpop.f32.mrb[1].mxu1  ;;  %v416_v30 = vmul.f32 %v509_v9, %v509_v9  ;;  %v424_v62 = vmul.f32 %v517_v20, %v517_v20 }
  0xf7   :  { %373 = vst [vmem:[%s770_s4] sm:$0xff] %v310_v21  ;;  %v510_v23 = vpop.f32.mrb[2].mxu0  ;;  %381 = vst [vmem:[%s770_s4 + $0x40] sm:$0xff] %v342_v22  ;;  %v518_v24 = vpop.f32.mrb[2].mxu1  ;;  %v414_v27 = vmul.f32 %v310_v21, %v310_v21  ;;  %v422_v56 = vmul.f32 %v342_v22, %v342_v22 }
  0xf8   :  { %376 = vst [vmem:[%s770_s4 + $0x18] sm:$0xff] %v510_v23  ;;  %v313_v25 = vpop.f32.mrb[3].mxu0  ;;  %384 = vst [vmem:[%s770_s4 + $0x58] sm:$0xff] %v518_v24  ;;  %v345_v26 = vpop.f32.mrb[3].mxu1  ;;  %v417_v33 = vmul.f32 %v510_v23, %v510_v23  ;;  %v425_v1 = vmul.f32 %v518_v24, %v518_v24 }
  0xf9   :  { %374 = vst [vmem:[%s770_s4 + $0x8] sm:$0xff] %v313_v25  ;;  %v390_v28 = vadd.f32 %v313_v25, %v310_v21  ;;  %v415_v29 = vmul.f32 %v313_v25, %v313_v25  ;;  %382 = vst [vmem:[%s770_s4 + $0x48] sm:$0xff] %v345_v26  ;;  %v423_v61 = vmul.f32 %v345_v26, %v345_v26 }
  0xfb   :  { %v391_v31 = vadd.f32 %v509_v9, %v390_v28  ;;  %v430_v32 = vadd.f32 %v415_v29, %v414_v27  ;;  %v413_v29 = vld [vmem:[%s769_s6] sm:$0x1] }
  0xfd   :  { %v431_v34 = vadd.f32 %v430_v32, %v416_v30  ;;  %v513_v35 = vpop.f32.mrb[4].mxu0  ;;  %v392_v36 = vadd.f32 %v510_v23, %v391_v31  ;;  %v521_v37 = vpop.f32.mrb[4].mxu1 }
  0xfe   :  { %379 = vst [vmem:[%s770_s4 + $0x30] sm:$0xff] %v513_v35  ;;  %v326_v38 = vpop.f32.mrb[5].mxu0  ;;  %387 = vst [vmem:[%s770_s4 + $0x70] sm:$0xff] %v521_v37  ;;  %v358_v39 = vpop.f32.mrb[5].mxu1  ;;  %v420_v50 = vmul.f32 %v513_v35, %v513_v35  ;;  %v428_v6 = vmul.f32 %v521_v37, %v521_v37 }
  0xff   :  { %377 = vst [vmem:[%s770_s4 + $0x20] sm:$0xff] %v326_v38  ;;  %v393_v40 = vadd.f32 %v392_v36, %v326_v38  ;;  %v418_v41 = vmul.f32 %v326_v38, %v326_v38  ;;  %v432_v42 = vadd.f32 %v431_v34, %v417_v33  ;;  %v514_v43 = vpop.f32.mrb[6].mxu0  ;;  %385 = vst [vmem:[%s770_s4 + $0x60] sm:$0xff] %v358_v39  ;;  %v522_v44 = vpop.f32.mrb[6].mxu1 }
 0x100   :  { %380 = vst [vmem:[%s770_s4 + $0x38] sm:$0xff] %v514_v43  ;;  %v329_v45 = vpop.f32.mrb[7].mxu0  ;;  %388 = vst [vmem:[%s770_s4 + $0x78] sm:$0xff] %v522_v44  ;;  %v361_v46 = vpop.f32.mrb[7].mxu1  ;;  %v421_v53 = vmul.f32 %v514_v43, %v514_v43  ;;  %v426_v4 = vmul.f32 %v358_v39, %v358_v39  ;;  %v429_v14 = vmul.f32 %v522_v44, %v522_v44 }
 0x101   :  { %v433_v47 = vadd.f32 %v432_v42, %v418_v41  ;;  %378 = vst [vmem:[%s770_s4 + $0x28] sm:$0xff] %v329_v45  ;;  %v394_v48 = vadd.f32 %v393_v40, %v329_v45  ;;  %v419_v49 = vmul.f32 %v329_v45, %v329_v45  ;;  %386 = vst [vmem:[%s770_s4 + $0x68] sm:$0xff] %v361_v46 }
 0x102   :  { %v427_v11 = vmul.f32 %v361_v46, %v361_v46 }
 0x103   :  { %v395_v51 = vadd.f32 %v513_v35, %v394_v48  ;;  %v434_v52 = vadd.f32 %v433_v47, %v419_v49 }
 0x105   :  { %v435_v54 = vadd.f32 %v434_v52, %v420_v50  ;;  %v396_v55 = vadd.f32 %v514_v43, %v395_v51 }
 0x107   :  { %v397_v57 = vadd.f32 %v396_v55, %v342_v22  ;;  %v436_v58 = vadd.f32 %v435_v54, %v421_v53 }
 0x109   :  { %v437_v59 = vadd.f32 %v436_v58, %v422_v56  ;;  %v398_v60 = vadd.f32 %v397_v57, %v345_v26  ;;  %v389_v26 = vld [vmem:[%s768_s5] sm:$0x1] }
 0x10b   :  { %v399_v63 = vadd.f32 %v517_v20, %v398_v60  ;;  %v438_v0 = vadd.f32 %v437_v59, %v423_v61 }
 0x10d   :  { %v439_v2 = vadd.f32 %v438_v0, %v424_v62  ;;  %v400_v3 = vadd.f32 %v518_v24, %v399_v63 }
 0x10f   :  { %v401_v5 = vadd.f32 %v400_v3, %v358_v39  ;;  %v440_v7 = vadd.f32 %v439_v2, %v425_v1 }
 0x111   :  { %v441_v8 = vadd.f32 %v440_v7, %v426_v4  ;;  %v402_v10 = vadd.f32 %v401_v5, %v361_v46 }
 0x113   :  { %v403_v12 = vadd.f32 %v521_v37, %v402_v10  ;;  %v442_v13 = vadd.f32 %v441_v8, %v427_v11 }
 0x115   :  { %v404_v15 = vadd.f32 %v522_v44, %v403_v12  ;;  %v443_v16 = vadd.f32 %v442_v13, %v428_v6 }
 0x117   :  { %v405_v17 = vrot.slane %v404_v15, 4  ;;  %v444_v18 = vadd.f32 %v443_v16, %v429_v14 }
 0x119   :  { %v406_v19 = vadd.f32 %v405_v17, %v404_v15  ;;  %v445_v9 = vrot.slane %v444_v18, 4 }
 0x11b   :  { %v407_v20 = vrot.slane %v406_v19, 2  ;;  %v446_v21 = vadd.f32 %v445_v9, %v444_v18 }
 0x11d   :  { %v408_v22 = vadd.f32 %v407_v20, %v406_v19  ;;  %v447_v23 = vrot.slane %v446_v21, 2 }
 0x11f   :  { %v409_v24 = vrot.slane %v408_v22, 1  ;;  %v448_v25 = vadd.f32 %v447_v23, %v446_v21 }
 0x121   :  { %v410_v27 = vadd.f32 %v409_v24, %v408_v22  ;;  %v449_v28 = vrot.slane %v448_v25, 1 }
 0x123   :  { %v411_v30 = vadd.f32 %v410_v27, %v389_v26  ;;  %v450_v31 = vadd.f32 %v449_v28, %v448_v25 }
 0x125   :  { %412 = vst [vmem:[%s768_s5] sm:$0x1] %v411_v30  ;;  %v451_v32 = vadd.f32 %v450_v31, %v413_v29 }
 0x127   :  { %452 = vst [vmem:[%s769_s6] sm:$0x1] %v451_v32 }

// kernel: vqvae_decoder_forward.20
= control target key start
LH: loop header
LB: loop body
LE: loop exit
PB: predicated region body
PF: predicated region fallthrough
CT: control target
= control target key end

     0   :  { %vm317_vm0 = vcmask 261120   ;;  %v839_v42 = vmov 0.0   ;;  %s1077_s1 = inlined_call_operand.vmem [shape: bf16[288,128], index: 1, kind: input, shape index: {}]   ;;  %s1078_s0 = inlined_call_operand.vmem [shape: bf16[128,288], index: 0, kind: input, shape index: {}]   ;;  %s1079_s3 = inlined_call_operand.vmem [shape: f32[1,128], index: 3, kind: output, shape index: {1}]   ;;  %s1080_s4 = inlined_call_operand.vmem [shape: f32[1,128], index: 4, kind: output, shape index: {2}]   ;;  %s1081_s2 = inlined_call_operand.vmem [shape: f32[128,128], index: 2, kind: output, shape index: {0}]  }
   0x1   :  { %v789_v0 = vld [vmem:[%s1077_s1 + $0x40] sm:$0xff]   ;;  %v791_v2 = vld [vmem:[%s1077_s1 + $0x48] sm:$0xff]   ;;  %v793_v4 = vld [vmem:[%s1077_s1 + $0x50] sm:$0xff]   ;;  %19 = vst [vmem:[%s1079_s3] sm:$0x1] %v839_v42 }
   0x2   :  { %v790_v1 = vld [vmem:[%s1077_s1] sm:$0xff]   ;;  %678 = vmatprep.subr.bf16.mxu0 %v789_v0  ;;  %772 = vmatprep.subr.bf16.mxu1 %v789_v0  ;;  %v792_v3 = vld [vmem:[%s1077_s1 + $0x8] sm:$0xff]   ;;  %v794_v5 = vld [vmem:[%s1077_s1 + $0x10] sm:$0xff]   ;;  %20 = vst [vmem:[%s1080_s4] sm:$0x1] %v839_v42 }
   0x3   :  { %679 = vmatpush3.bf16.msra.mxu0 %v790_v1  ;;  %780 = vmatpush3.bf16.msra.mxu1 %v790_v1  ;;  %v795_v6 = vld [vmem:[%s1077_s1 + $0x58] sm:$0xff]   ;;  %v797_v8 = vld [vmem:[%s1077_s1 + $0x60] sm:$0xff]   ;;  %v799_v10 = vld [vmem:[%s1077_s1 + $0x68] sm:$0xff]  }
   0x4   :  { %680 = vmatprep.subr.bf16.mxu0 %v791_v2  ;;  %773 = vmatprep.subr.bf16.mxu1 %v791_v2  ;;  %v796_v7 = vld [vmem:[%s1077_s1 + $0x18] sm:$0xff]   ;;  %v798_v9 = vld [vmem:[%s1077_s1 + $0x20] sm:$0xff]   ;;  %v800_v13 = vld [vmem:[%s1077_s1 + $0x28] sm:$0xff]  }
   0x5   :  { %v807_v11 = vld [vmem:[%s1078_s0 + $0x4] ss:$12 sps:$4 sm:$0xff]   ;;  %v810_v12 = vld [vmem:[%s1078_s0 + $0x94] ss:$12 sps:$4 sm:$0xff]   ;;  %v803_v16 = vld [vmem:[%s1077_s1 + $0x78] sm:$0xff]  }
   0x6   :  { %v801_v14 = vld [vmem:[%s1077_s1 + $0x70] sm:$0xff]   ;;  %374 = vmatprep.mubr.bf16.mxu0 %v807_v11  ;;  %422 = vmatprep.mubr.bf16.mxu1 %v810_v12  ;;  %v804_v17 = vld [vmem:[%s1077_s1 + $0x38] sm:$0xff]   ;;  %v805_v18 = vld [vmem:[%s1078_s0] ss:$12 sps:$4 sm:$0xff]  }
   0x7   :  { %681 = vmatpush3.bf16.msra.mxu0 %v792_v3  ;;  %781 = vmatpush3.bf16.msra.mxu1 %v792_v3  ;;  %v802_v15 = vld [vmem:[%s1077_s1 + $0x30] sm:$0xff]   ;;  %v811_v19 = vld [vmem:[%s1077_s1 + $0x80] sm:$0xff]   ;;  %v812_v21 = vld [vmem:[%s1078_s0 + $0x1c] ss:$12 sps:$4 sm:$0xff]  }
   0x8   :  { %682 = vmatprep.subr.bf16.mxu0 %v793_v4  ;;  %774 = vmatprep.subr.bf16.mxu1 %v793_v4  ;;  %v808_v20 = vld [vmem:[%s1078_s0 + $0x90] ss:$12 sps:$4 sm:$0xff]   ;;  %v814_v22 = vld [vmem:[%s1078_s0 + $0xac] ss:$12 sps:$4 sm:$0xff]   ;;  %v817_v25 = vld [vmem:[%s1078_s0 + $0xa8] ss:$12 sps:$4 sm:$0xff]  }
   0x9   :  { %v818_v23 = vld [vmem:[%s1077_s1 + $0x88] sm:$0xff]   ;;  %v816_v24 = vld [vmem:[%s1078_s0 + $0x18] ss:$12 sps:$4 sm:$0xff]   ;;  %v819_v26 = vld [vmem:[%s1078_s0 + $0x34] ss:$12 sps:$4 sm:$0xff]  }
   0xa   :  { %v821_v27 = vld [vmem:[%s1078_s0 + $0x8] ss:$12 sps:$4 sm:$0xff]   ;;  %v822_v28 = vld [vmem:[%s1078_s0 + $0x30] ss:$12 sps:$4 sm:$0xff]   ;;  %v823_v29 = vld [vmem:[%s1078_s0 + $0x20] ss:$12 sps:$4 sm:$0xff]  }
   0xb   :  { %683 = vmatpush3.bf16.msra.mxu0 %v794_v5  ;;  %782 = vmatpush3.bf16.msra.mxu1 %v794_v5  ;;  %v824_v30 = vld [vmem:[%s1078_s0 + $0x4c] ss:$12 sps:$4 sm:$0xff]   ;;  %v827_v32 = vld [vmem:[%s1078_s0 + $0x48] ss:$12 sps:$4 sm:$0xff]   ;;  %v828_v33 = vld [vmem:[%s1078_s0 + $0x50] ss:$12 sps:$4 sm:$0xff]  }
   0xc   :  { %684 = vmatprep.subr.bf16.mxu0 %v795_v6  ;;  %775 = vmatprep.subr.bf16.mxu1 %v795_v6  ;;  %v826_v31 = vld [vmem:[%s1078_s0 + $0x38] ss:$12 sps:$4 sm:$0xff]   ;;  %v831_v35 = vld [vmem:[%s1078_s0 + $0x68] ss:$12 sps:$4 sm:$0xff]   ;;  %v832_v36 = vld [vmem:[%s1078_s0 + $0x60] ss:$12 sps:$4 sm:$0xff]  }
   0xd   :  { %v829_v34 = vld [vmem:[%s1078_s0 + $0x64] ss:$12 sps:$4 sm:$0xff]   ;;  %v833_v37 = vld [vmem:[%s1078_s0 + $0x80] ss:$12 sps:$4 sm:$0xff]   ;;  %v834_v38 = vld [vmem:[%s1078_s0 + $0x7c] ss:$12 sps:$4 sm:$0xff]  }
   0xe   :  { %v836_v39 = vld [vmem:[%s1078_s0 + $0x98] ss:$12 sps:$4 sm:$0xff]   ;;  %v838_v41 = vld [vmem:[%s1078_s0 + $0xb0] ss:$12 sps:$4 sm:$0xff]  }
   0xf   :  { %685 = vmatpush3.bf16.msra.mxu0 %v796_v7  ;;  %783 = vmatpush3.bf16.msra.mxu1 %v796_v7  ;;  %v837_v40 = vld [vmem:[%s1078_s0 + $0x78] ss:$12 sps:$4 sm:$0xff]  }
  0x10   :  { %686 = vmatprep.subr.bf16.mxu0 %v797_v8  ;;  %776 = vmatprep.subr.bf16.mxu1 %v797_v8 }
  0x13   :  { %687 = vmatpush3.bf16.msra.mxu0 %v798_v9  ;;  %784 = vmatpush3.bf16.msra.mxu1 %v798_v9 }
  0x14   :  { %688 = vmatprep.subr.bf16.mxu0 %v799_v10  ;;  %777 = vmatprep.subr.bf16.mxu1 %v799_v10 }
  0x17   :  { %689 = vmatpush3.bf16.msra.mxu0 %v800_v13  ;;  %785 = vmatpush3.bf16.msra.mxu1 %v800_v13 }
  0x18   :  { %690 = vmatprep.subr.bf16.mxu0 %v801_v14  ;;  %778 = vmatprep.subr.bf16.mxu1 %v801_v14 }
  0x1b   :  { %691 = vmatpush3.bf16.msra.mxu0 %v802_v15  ;;  %786 = vmatpush3.bf16.msra.mxu1 %v802_v15 }
  0x1c   :  { %692 = vmatprep.subr.bf16.mxu0 %v803_v16  ;;  %779 = vmatprep.subr.bf16.mxu1 %v803_v16 }
  0x1f   :  { %693 = vmatpush3.bf16.msra.mxu0 %v804_v17  ;;  %787 = vmatpush3.bf16.msra.mxu1 %v804_v17 }
  0x20   :  { %752 = vmatprep.subr.bf16.mxu1 %v811_v19 }
  0x22   :  { %375 = vmatmul.mubr.bf16.vlgmr.msra.gmra.mrb[0].mxu0 %v805_v18  ;;  %423 = vmatmul.mubr.bf16.vlgmr.msra.gmra.mrb[0].mxu1 %v808_v20 }
  0x23   :  { %753 = vmatpush3.bf16.msra.mxu1 %v811_v19  ;;  %382 = vmatprep.mubr.bf16.mxu0 %v812_v21 }
  0x24   :  { %430 = vmatprep.mubr.bf16.mxu1 %v814_v22  ;;  %754 = vmatprep.subr.bf16.mxu1 %v818_v23 }
  0x27   :  { %755 = vmatpush3.bf16.msra.mxu1 %v818_v23 }
  0x2a   :  { %383 = vmatmul.mubr.bf16.gmra.mrb[4].mxu0 %v816_v24  ;;  %431 = vmatmul.mubr.bf16.gmra.mrb[4].mxu1 %v817_v25 }
  0x2b   :  { %390 = vmatprep.mubr.bf16.mxu0 %v819_v26  ;;  %756 = vmatprep.mubr.msk.bf16.mxu1 %vm317_vm0, %v821_v27 }
  0x32   :  { %391 = vmatmul.mubr.bf16.gmra.mrb[8].mxu0 %v822_v28  ;;  %757 = vmatmul.mubr.msk.bf16.vlgmr.msra.gmra.mrb[8].mxu1 %vm317_vm0, %v823_v29 }
  0x33   :  { %398 = vmatprep.mubr.bf16.mxu0 %v824_v30  ;;  %760 = vmatprep.mubr.msk.bf16.mxu1 %vm317_vm0, %v826_v31 }
  0x3a   :  { %399 = vmatmul.mubr.bf16.gmra.mrb[12].mxu0 %v827_v32  ;;  %761 = vmatmul.mubr.msk.bf16.gmra.mrb[12].mxu1 %vm317_vm0, %v828_v33 }
  0x3b   :  { %406 = vmatprep.mubr.bf16.mxu0 %v829_v34  ;;  %764 = vmatprep.mubr.msk.bf16.mxu1 %vm317_vm0, %v831_v35 }
  0x42   :  { %407 = vmatmul.mubr.bf16.gmra.mrb[16].mxu0 %v832_v36  ;;  %765 = vmatmul.mubr.msk.bf16.gmra.mrb[16].mxu1 %vm317_vm0, %v833_v37 }
  0x43   :  { %414 = vmatprep.mubr.bf16.mxu0 %v834_v38  ;;  %768 = vmatprep.mubr.msk.bf16.mxu1 %vm317_vm0, %v836_v39 }
  0x4a   :  { %415 = vmatmul.mubr.bf16.gmra.mrb[20].mxu0 %v837_v40  ;;  %769 = vmatmul.mubr.msk.bf16.gmra.mrb[20].mxu1 %vm317_vm0, %v838_v41 }
  0xf5   :  { %v694_v43 = vpop.f32.mrb[0].mxu0  ;;  %v730_v44 = vpop.f32.mrb[0].mxu1 }
  0xf6   :  { %v695_v45 = vpop.f32.mrb[1].mxu0  ;;  %v731_v46 = vpop.f32.mrb[1].mxu1 }
  0xf7   :  { %v696_v47 = vadd.f32 %v695_v45, %v694_v43  ;;  %v697_v48 = vpop.f32.mrb[2].mxu0  ;;  %v1005_v49 = vadd.f32 %v731_v46, %v730_v44  ;;  %v733_v50 = vpop.f32.mrb[2].mxu1 }
  0xf8   :  { %v698_v51 = vpop.f32.mrb[3].mxu0  ;;  %v734_v52 = vpop.f32.mrb[3].mxu1 }
  0xf9   :  { %v699_v53 = vadd.f32 %v698_v51, %v697_v48  ;;  %v1007_v54 = vadd.f32 %v734_v52, %v733_v50 }
  0xfd   :  { %v700_v55 = vpop.f32.mrb[4].mxu0  ;;  %v736_v56 = vpop.f32.mrb[4].mxu1 }
  0xfe   :  { %v701_v57 = vpop.f32.mrb[5].mxu0  ;;  %v737_v58 = vpop.f32.mrb[5].mxu1 }
  0xff   :  { %v702_v59 = vadd.f32 %v701_v57, %v700_v55  ;;  %v703_v60 = vpop.f32.mrb[6].mxu0  ;;  %v1009_v61 = vadd.f32 %v737_v58, %v736_v56  ;;  %v739_v62 = vpop.f32.mrb[6].mxu1 }
 0x100   :  { %v704_v63 = vpop.f32.mrb[7].mxu0  ;;  %v740_v0 = vpop.f32.mrb[7].mxu1 }
 0x101   :  { %v705_v1 = vadd.f32 %v704_v63, %v703_v60  ;;  %v1011_v2 = vadd.f32 %v740_v0, %v739_v62 }
 0x105   :  { %v706_v3 = vpop.f32.mrb[8].mxu0  ;;  %v758_v4 = vpop.f32.mrb[8].mxu1 }
 0x106   :  { %v482_v5 = vadd.f32 %v758_v4, %v702_v59  ;;  %v707_v6 = vpop.f32.mrb[9].mxu0  ;;  %v473_v7 = vpop.f32.mrb[9].mxu1 }
 0x107   :  { %v708_v8 = vadd.f32 %v707_v6, %v706_v3  ;;  %v474_v9 = vadd.f32 %v696_v47, %v473_v7  ;;  %v709_v10 = vpop.f32.mrb[10].mxu0  ;;  %v759_v11 = vpop.f32.mrb[10].mxu1 }
 0x108   :  { %538 = vst [vmem:[%s1081_s2 + $0x10] sm:$0xff] %v482_v5  ;;  %v485_v12 = vadd.f32 %v759_v11, %v705_v1  ;;  %v710_v13 = vpop.f32.mrb[11].mxu0  ;;  %v476_v14 = vpop.f32.mrb[11].mxu1  ;;  %v579_v20 = vmul.f32 %v482_v5, %v482_v5 }
 0x109   :  { %536 = vst [vmem:[%s1081_s2] sm:$0xff] %v474_v9  ;;  %v711_v15 = vadd.f32 %v710_v13, %v709_v10  ;;  %v477_v16 = vadd.f32 %v699_v53, %v476_v14  ;;  %v577_v17 = vmul.f32 %v474_v9, %v474_v9 }
 0x10a   :  { %539 = vst [vmem:[%s1081_s2 + $0x18] sm:$0xff] %v485_v12  ;;  %v580_v25 = vmul.f32 %v485_v12, %v485_v12 }
 0x10b   :  { %537 = vst [vmem:[%s1081_s2 + $0x8] sm:$0xff] %v477_v16  ;;  %v553_v18 = vadd.f32 %v477_v16, %v474_v9  ;;  %v578_v19 = vmul.f32 %v477_v16, %v477_v16 }
 0x10d   :  { %v554_v21 = vadd.f32 %v553_v18, %v482_v5  ;;  %v593_v22 = vadd.f32 %v578_v19, %v577_v17  ;;  %v712_v23 = vpop.f32.mrb[12].mxu0  ;;  %v762_v24 = vpop.f32.mrb[12].mxu1 }
 0x10e   :  { %v713_v26 = vpop.f32.mrb[13].mxu0  ;;  %v489_v27 = vpop.f32.mrb[13].mxu1 }
 0x10f   :  { %v594_v28 = vadd.f32 %v593_v22, %v579_v20  ;;  %v714_v29 = vadd.f32 %v713_v26, %v712_v23  ;;  %v490_v30 = vadd.f32 %v708_v8, %v489_v27  ;;  %v555_v31 = vadd.f32 %v554_v21, %v485_v12  ;;  %v715_v32 = vpop.f32.mrb[14].mxu0  ;;  %v763_v33 = vpop.f32.mrb[14].mxu1 }
 0x110   :  { %v716_v34 = vpop.f32.mrb[15].mxu0  ;;  %v492_v35 = vpop.f32.mrb[15].mxu1 }
 0x111   :  { %v498_v36 = vadd.f32 %v762_v24, %v714_v29  ;;  %540 = vst [vmem:[%s1081_s2 + $0x20] sm:$0xff] %v490_v30  ;;  %v556_v37 = vadd.f32 %v555_v31, %v490_v30  ;;  %v581_v38 = vmul.f32 %v490_v30, %v490_v30  ;;  %v595_v39 = vadd.f32 %v594_v28, %v580_v25 }
 0x112   :  { %v717_v40 = vadd.f32 %v716_v34, %v715_v32  ;;  %v493_v41 = vadd.f32 %v711_v15, %v492_v35 }
 0x113   :  { %542 = vst [vmem:[%s1081_s2 + $0x30] sm:$0xff] %v498_v36  ;;  %v596_v42 = vadd.f32 %v595_v39, %v581_v38  ;;  %v583_v48 = vmul.f32 %v498_v36, %v498_v36 }
 0x114   :  { %v501_v43 = vadd.f32 %v763_v33, %v717_v40  ;;  %541 = vst [vmem:[%s1081_s2 + $0x28] sm:$0xff] %v493_v41  ;;  %v557_v44 = vadd.f32 %v556_v37, %v493_v41  ;;  %v582_v45 = vmul.f32 %v493_v41, %v493_v41 }
 0x115   :  { %v718_v46 = vpop.f32.mrb[16].mxu0  ;;  %v766_v47 = vpop.f32.mrb[16].mxu1 }
 0x116   :  { %543 = vst [vmem:[%s1081_s2 + $0x38] sm:$0xff] %v501_v43  ;;  %v558_v50 = vadd.f32 %v557_v44, %v498_v36  ;;  %v597_v51 = vadd.f32 %v596_v42, %v582_v45  ;;  %v719_v52 = vpop.f32.mrb[17].mxu0  ;;  %v505_v53 = vpop.f32.mrb[17].mxu1  ;;  %v584_v58 = vmul.f32 %v501_v43, %v501_v43 }
 0x117   :  { %v720_v55 = vadd.f32 %v719_v52, %v718_v46  ;;  %v721_v56 = vpop.f32.mrb[18].mxu0  ;;  %v767_v57 = vpop.f32.mrb[18].mxu1 }
 0x118   :  { %v598_v59 = vadd.f32 %v597_v51, %v583_v48  ;;  %v722_v60 = vpop.f32.mrb[19].mxu0  ;;  %v559_v62 = vadd.f32 %v558_v50, %v501_v43  ;;  %v508_v63 = vpop.f32.mrb[19].mxu1  ;;  %v552_v51 = vld [vmem:[%s1079_s3] sm:$0x1] }
 0x119   :  { %v723_v0 = vadd.f32 %v722_v60, %v721_v56  ;;  %v506_v1 = vadd.f32 %v720_v55, %v505_v53  ;;  %v576_v55 = vld [vmem:[%s1080_s4] sm:$0x1] }
 0x11a   :  { %v599_v3 = vadd.f32 %v598_v59, %v584_v58 }
 0x11b   :  { %544 = vst [vmem:[%s1081_s2 + $0x40] sm:$0xff] %v506_v1  ;;  %v560_v4 = vadd.f32 %v559_v62, %v506_v1  ;;  %v585_v5 = vmul.f32 %v506_v1, %v506_v1  ;;  %v509_v6 = vadd.f32 %v723_v0, %v508_v63 }
 0x11d   :  { %v600_v7 = vadd.f32 %v599_v3, %v585_v5  ;;  %545 = vst [vmem:[%s1081_s2 + $0x48] sm:$0xff] %v509_v6  ;;  %v561_v8 = vadd.f32 %v560_v4, %v509_v6  ;;  %v586_v9 = vmul.f32 %v509_v6, %v509_v6  ;;  %v724_v10 = vpop.f32.mrb[20].mxu0  ;;  %v770_v11 = vpop.f32.mrb[20].mxu1 }
 0x11e   :  { %v530_v12 = vadd.f32 %v770_v11, %v1009_v61  ;;  %v725_v13 = vpop.f32.mrb[21].mxu0  ;;  %v521_v14 = vpop.f32.mrb[21].mxu1 }
 0x11f   :  { %v601_v15 = vadd.f32 %v600_v7, %v586_v9  ;;  %v726_v16 = vadd.f32 %v725_v13, %v724_v10  ;;  %v522_v17 = vadd.f32 %v1005_v49, %v521_v14  ;;  %v727_v18 = vpop.f32.mrb[22].mxu0  ;;  %v771_v19 = vpop.f32.mrb[22].mxu1 }
 0x120   :  { %550 = vst [vmem:[%s1081_s2 + $0x70] sm:$0xff] %v530_v12  ;;  %v533_v20 = vadd.f32 %v771_v19, %v1011_v2  ;;  %v728_v21 = vpop.f32.mrb[23].mxu0  ;;  %v524_v22 = vpop.f32.mrb[23].mxu1  ;;  %v591_v34 = vmul.f32 %v530_v12, %v530_v12 }
 0x121   :  { %v514_v23 = vadd.f32 %v766_v47, %v726_v16  ;;  %548 = vst [vmem:[%s1081_s2 + $0x60] sm:$0xff] %v522_v17  ;;  %v729_v61 = vadd.f32 %v728_v21, %v727_v18  ;;  %v525_v24 = vadd.f32 %v1007_v54, %v524_v22  ;;  %v589_v28 = vmul.f32 %v522_v17, %v522_v17 }
 0x122   :  { %551 = vst [vmem:[%s1081_s2 + $0x78] sm:$0xff] %v533_v20  ;;  %v592_v37 = vmul.f32 %v533_v20, %v533_v20 }
 0x123   :  { %546 = vst [vmem:[%s1081_s2 + $0x50] sm:$0xff] %v514_v23  ;;  %v562_v49 = vadd.f32 %v561_v8, %v514_v23  ;;  %v587_v2 = vmul.f32 %v514_v23, %v514_v23  ;;  %v517_v25 = vadd.f32 %v767_v57, %v729_v61  ;;  %549 = vst [vmem:[%s1081_s2 + $0x68] sm:$0xff] %v525_v24 }
 0x124   :  { %v590_v32 = vmul.f32 %v525_v24, %v525_v24 }
 0x125   :  { %v602_v26 = vadd.f32 %v601_v15, %v587_v2  ;;  %547 = vst [vmem:[%s1081_s2 + $0x58] sm:$0xff] %v517_v25  ;;  %v563_v54 = vadd.f32 %v562_v49, %v517_v25  ;;  %v588_v27 = vmul.f32 %v517_v25, %v517_v25 }
 0x127   :  { %v603_v29 = vadd.f32 %v602_v26, %v588_v27  ;;  %v564_v30 = vadd.f32 %v563_v54, %v522_v17 }
 0x129   :  { %v565_v31 = vadd.f32 %v564_v30, %v525_v24  ;;  %v604_v33 = vadd.f32 %v603_v29, %v589_v28 }
 0x12b   :  { %v566_v35 = vadd.f32 %v565_v31, %v530_v12  ;;  %v605_v36 = vadd.f32 %v604_v33, %v590_v32 }
 0x12d   :  { %v567_v38 = vadd.f32 %v566_v35, %v533_v20  ;;  %v606_v39 = vadd.f32 %v605_v36, %v591_v34 }
 0x12f   :  { %v568_v40 = vrot.slane %v567_v38, 4  ;;  %v607_v41 = vadd.f32 %v606_v39, %v592_v37 }
 0x131   :  { %v569_v42 = vadd.f32 %v568_v40, %v567_v38  ;;  %v608_v43 = vrot.slane %v607_v41, 4 }
 0x133   :  { %v570_v44 = vrot.slane %v569_v42, 2  ;;  %v609_v45 = vadd.f32 %v608_v43, %v607_v41 }
 0x135   :  { %v571_v46 = vadd.f32 %v570_v44, %v569_v42  ;;  %v610_v47 = vrot.slane %v609_v45, 2 }
 0x137   :  { %v572_v48 = vrot.slane %v571_v46, 1  ;;  %v611_v50 = vadd.f32 %v610_v47, %v609_v45 }
 0x139   :  { %v573_v52 = vadd.f32 %v572_v48, %v571_v46  ;;  %v612_v53 = vrot.slane %v611_v50, 1 }
 0x13b   :  { %v574_v56 = vadd.f32 %v573_v52, %v552_v51  ;;  %v613_v57 = vadd.f32 %v612_v53, %v611_v50 }
 0x13d   :  { %575 = vst [vmem:[%s1079_s3] sm:$0x1] %v574_v56  ;;  %v614_v58 = vadd.f32 %v613_v57, %v576_v55 }
 0x13f   :  { %615 = vst [vmem:[%s1080_s4] sm:$0x1] %v614_v58 }

// kernel: vqvae_decoder_forward.27
= control target key start
LH: loop header
LB: loop body
LE: loop exit
PB: predicated region body
PF: predicated region fallthrough
CT: control target
= control target key end

     0   :  { %s254_s0 = inlined_call_operand.vmem [shape: f32[128,128], index: 0, kind: input, shape index: {}]   ;;  %s255_s1 = inlined_call_operand.vmem [shape: f32[1,128], index: 1, kind: input, shape index: {}]   ;;  %s256_s2 = inlined_call_operand.vmem [shape: f32[1,128], index: 2, kind: input, shape index: {}]   ;;  %s257_s3 = inlined_call_operand.vmem [shape: f32[128,128], index: 3, kind: output, shape index: {}]  }
   0x1   :  { %v14_v0 = vld [vmem:[%s254_s0] sm:$0xff]  ;;  %v15_v4 = vld [vmem:[%s254_s0 + $0x8] sm:$0xff]  ;;  %v16_v5 = vld [vmem:[%s254_s0 + $0x10] sm:$0xff] }
   0x2   :  { %v112_v1 = vld [vmem:[%s255_s1] ss:$0 sm:$0xff]  ;;  %v17_v6 = vld [vmem:[%s254_s0 + $0x18] sm:$0xff]  ;;  %v19_v11 = vld [vmem:[%s254_s0 + $0x28] sm:$0xff] }
   0x3   :  { %v143_v2 = vld [vmem:[%s256_s2] ss:$0 sm:$0xff]  ;;  %v37_v3 = vmul.f32 %v112_v1, %v14_v0  ;;  %v38_v7 = vmul.f32 %v112_v1, %v15_v4  ;;  %v39_v8 = vmul.f32 %v112_v1, %v16_v5  ;;  %v40_v9 = vmul.f32 %v112_v1, %v17_v6  ;;  %v20_v12 = vld [vmem:[%s254_s0 + $0x30] sm:$0xff]  ;;  %v21_v17 = vld [vmem:[%s254_s0 + $0x38] sm:$0xff] }
   0x4   :  { %v18_v10 = vld [vmem:[%s254_s0 + $0x20] sm:$0xff]  ;;  %v42_v15 = vmul.f32 %v112_v1, %v19_v11  ;;  %v43_v16 = vmul.f32 %v112_v1, %v20_v12  ;;  %v44_v21 = vmul.f32 %v112_v1, %v21_v17  ;;  %v23_v27 = vld [vmem:[%s254_s0 + $0x48] sm:$0xff]  ;;  %v24_v28 = vld [vmem:[%s254_s0 + $0x50] sm:$0xff] }
   0x5   :  { %v60_v13 = vadd.f32 %v143_v2, %v37_v3  ;;  %v41_v14 = vmul.f32 %v112_v1, %v18_v10  ;;  %v61_v18 = vadd.f32 %v143_v2, %v38_v7  ;;  %v62_v19 = vadd.f32 %v143_v2, %v39_v8  ;;  %v22_v22 = vld [vmem:[%s254_s0 + $0x40] sm:$0xff]  ;;  %v25_v29 = vld [vmem:[%s254_s0 + $0x58] sm:$0xff]  ;;  %v27_v35 = vld [vmem:[%s254_s0 + $0x68] sm:$0xff] }
   0x6   :  { %v63_v20 = vadd.f32 %v143_v2, %v40_v9  ;;  %v65_v25 = vadd.f32 %v143_v2, %v42_v15  ;;  %v66_v26 = vadd.f32 %v143_v2, %v43_v16  ;;  %v67_v33 = vadd.f32 %v143_v2, %v44_v21  ;;  %v26_v34 = vld [vmem:[%s254_s0 + $0x60] sm:$0xff]  ;;  %v28_v36 = vld [vmem:[%s254_s0 + $0x70] sm:$0xff]  ;;  %v29_v41 = vld [vmem:[%s254_s0 + $0x78] sm:$0xff] }
   0x7   :  { %v76_v23 = vmax.f32 %v60_v13, 0.0  ;;  %v64_v24 = vadd.f32 %v143_v2, %v41_v14  ;;  %v77_v30 = vmax.f32 %v61_v18, 0.0  ;;  %v78_v31 = vmax.f32 %v62_v19, 0.0 }
   0x8   :  { %v79_v32 = vmax.f32 %v63_v20, 0.0  ;;  %v81_v38 = vmax.f32 %v65_v25, 0.0  ;;  %v82_v39 = vmax.f32 %v66_v26, 0.0  ;;  %v45_v40 = vmul.f32 %v112_v1, %v22_v22 }
   0x9   :  { %92 = vst [vmem:[%s257_s3] sm:$0xff] %v76_v23  ;;  %v80_v37 = vmax.f32 %v64_v24, 0.0  ;;  %93 = vst [vmem:[%s257_s3 + $0x8] sm:$0xff] %v77_v30  ;;  %v83_v42 = vmax.f32 %v67_v33, 0.0  ;;  %v46_v43 = vmul.f32 %v112_v1, %v23_v27  ;;  %v47_v44 = vmul.f32 %v112_v1, %v24_v28 }
   0xa   :  { %94 = vst [vmem:[%s257_s3 + $0x10] sm:$0xff] %v78_v31  ;;  %95 = vst [vmem:[%s257_s3 + $0x18] sm:$0xff] %v79_v32  ;;  %v48_v45 = vmul.f32 %v112_v1, %v25_v29  ;;  %v68_v46 = vadd.f32 %v143_v2, %v45_v40  ;;  %v49_v47 = vmul.f32 %v112_v1, %v26_v34 }
   0xb   :  { %96 = vst [vmem:[%s257_s3 + $0x20] sm:$0xff] %v80_v37  ;;  %97 = vst [vmem:[%s257_s3 + $0x28] sm:$0xff] %v81_v38  ;;  %v50_v48 = vmul.f32 %v112_v1, %v27_v35  ;;  %v51_v49 = vmul.f32 %v112_v1, %v28_v36  ;;  %v69_v50 = vadd.f32 %v143_v2, %v46_v43 }
   0xc   :  { %98 = vst [vmem:[%s257_s3 + $0x30] sm:$0xff] %v82_v39  ;;  %99 = vst [vmem:[%s257_s3 + $0x38] sm:$0xff] %v83_v42  ;;  %v70_v51 = vadd.f32 %v143_v2, %v47_v44  ;;  %v71_v52 = vadd.f32 %v143_v2, %v48_v45  ;;  %v52_v53 = vmul.f32 %v112_v1, %v29_v41  ;;  %v84_v54 = vmax.f32 %v68_v46, 0.0 }
   0xd   :  { %v72_v55 = vadd.f32 %v143_v2, %v49_v47  ;;  %v73_v56 = vadd.f32 %v143_v2, %v50_v48  ;;  %v74_v57 = vadd.f32 %v143_v2, %v51_v49  ;;  %v85_v58 = vmax.f32 %v69_v50, 0.0 }
   0xe   :  { %v86_v59 = vmax.f32 %v70_v51, 0.0  ;;  %v87_v60 = vmax.f32 %v71_v52, 0.0  ;;  %v75_v61 = vadd.f32 %v143_v2, %v52_v53  ;;  %100 = vst [vmem:[%s257_s3 + $0x40] sm:$0xff] %v84_v54 }
   0xf   :  { %v88_v62 = vmax.f32 %v72_v55, 0.0  ;;  %v89_v63 = vmax.f32 %v73_v56, 0.0  ;;  %v90_v0 = vmax.f32 %v74_v57, 0.0  ;;  %101 = vst [vmem:[%s257_s3 + $0x48] sm:$0xff] %v85_v58 }
  0x10   :  { %102 = vst [vmem:[%s257_s3 + $0x50] sm:$0xff] %v86_v59  ;;  %103 = vst [vmem:[%s257_s3 + $0x58] sm:$0xff] %v87_v60  ;;  %v91_v1 = vmax.f32 %v75_v61, 0.0 }
  0x11   :  { %104 = vst [vmem:[%s257_s3 + $0x60] sm:$0xff] %v88_v62  ;;  %105 = vst [vmem:[%s257_s3 + $0x68] sm:$0xff] %v89_v63 }
  0x12   :  { %106 = vst [vmem:[%s257_s3 + $0x70] sm:$0xff] %v90_v0  ;;  %107 = vst [vmem:[%s257_s3 + $0x78] sm:$0xff] %v91_v1 }

// kernel: vqvae_decoder_forward.31
= control target key start
LH: loop header
LB: loop body
LE: loop exit
PB: predicated region body
PF: predicated region fallthrough
CT: control target
= control target key end

     0   :  { %v435_v16 = vmov 0.0   ;;  %s575_s1 = inlined_call_operand.vmem [shape: bf16[128,128], index: 1, kind: input, shape index: {}]   ;;  %s576_s0 = inlined_call_operand.vmem [shape: bf16[128,128], index: 0, kind: input, shape index: {}]   ;;  %s577_s3 = inlined_call_operand.vmem [shape: f32[1,128], index: 3, kind: output, shape index: {1}]   ;;  %s578_s4 = inlined_call_operand.vmem [shape: f32[1,128], index: 4, kind: output, shape index: {2}]   ;;  %s579_s2 = inlined_call_operand.vmem [shape: f32[128,128], index: 2, kind: output, shape index: {0}]  }
   0x1   :  { %v419_v0 = vld [vmem:[%s575_s1] sm:$0xff]   ;;  %v420_v1 = vld [vmem:[%s575_s1 + $0x8] sm:$0xff]   ;;  %v421_v2 = vld [vmem:[%s575_s1 + $0x10] sm:$0xff]   ;;  %19 = vst [vmem:[%s577_s3] sm:$0x1] %v435_v16 }
   0x2   :  { %370 = vmatprep.subr.bf16.mxu0 %v419_v0  ;;  %402 = vmatprep.subr.bf16.mxu1 %v419_v0  ;;  %v422_v3 = vld [vmem:[%s575_s1 + $0x18] sm:$0xff]   ;;  %v427_v4 = vld [vmem:[%s576_s0] sm:$0xff]   ;;  %v424_v7 = vld [vmem:[%s575_s1 + $0x28] sm:$0xff]   ;;  %20 = vst [vmem:[%s578_s4] sm:$0x1] %v435_v16 }
   0x3   :  { %371 = vmatpush3.bf16.msra.mxu0 %v419_v0  ;;  %410 = vmatpush3.bf16.msra.mxu1 %v419_v0  ;;  %v423_v5 = vld [vmem:[%s575_s1 + $0x20] sm:$0xff]   ;;  %v425_v8 = vld [vmem:[%s575_s1 + $0x30] sm:$0xff]   ;;  %v426_v9 = vld [vmem:[%s575_s1 + $0x38] sm:$0xff]  }
   0x4   :  { %372 = vmatprep.subr.bf16.mxu0 %v420_v1  ;;  %403 = vmatprep.subr.bf16.mxu1 %v420_v1  ;;  %v431_v6 = vld [vmem:[%s576_s0 + $0x20] sm:$0xff]   ;;  %v428_v10 = vld [vmem:[%s576_s0 + $0x8] sm:$0xff]   ;;  %v429_v12 = vld [vmem:[%s576_s0 + $0x10] sm:$0xff]  }
   0x5   :  { %386 = vmatprep.mubr.bf16.mxu0 %v427_v4  ;;  %394 = vmatprep.mubr.bf16.mxu1 %v431_v6  ;;  %v432_v11 = vld [vmem:[%s576_s0 + $0x28] sm:$0xff]   ;;  %v433_v13 = vld [vmem:[%s576_s0 + $0x30] sm:$0xff]   ;;  %v430_v14 = vld [vmem:[%s576_s0 + $0x18] sm:$0xff]  }
   0x6   :  { %v434_v15 = vld [vmem:[%s576_s0 + $0x38] sm:$0xff]  }
   0x7   :  { %373 = vmatpush3.bf16.msra.mxu0 %v420_v1  ;;  %411 = vmatpush3.bf16.msra.mxu1 %v420_v1 }
   0x8   :  { %374 = vmatprep.subr.bf16.mxu0 %v421_v2  ;;  %404 = vmatprep.subr.bf16.mxu1 %v421_v2 }
   0xb   :  { %375 = vmatpush3.bf16.msra.mxu0 %v421_v2  ;;  %412 = vmatpush3.bf16.msra.mxu1 %v421_v2 }
   0xc   :  { %376 = vmatprep.subr.bf16.mxu0 %v422_v3  ;;  %405 = vmatprep.subr.bf16.mxu1 %v422_v3 }
   0xf   :  { %377 = vmatpush3.bf16.msra.mxu0 %v422_v3  ;;  %413 = vmatpush3.bf16.msra.mxu1 %v422_v3 }
  0x10   :  { %378 = vmatprep.subr.bf16.mxu0 %v423_v5  ;;  %406 = vmatprep.subr.bf16.mxu1 %v423_v5 }
  0x13   :  { %379 = vmatpush3.bf16.msra.mxu0 %v423_v5  ;;  %414 = vmatpush3.bf16.msra.mxu1 %v423_v5 }
  0x14   :  { %380 = vmatprep.subr.bf16.mxu0 %v424_v7  ;;  %407 = vmatprep.subr.bf16.mxu1 %v424_v7 }
  0x17   :  { %381 = vmatpush3.bf16.msra.mxu0 %v424_v7  ;;  %415 = vmatpush3.bf16.msra.mxu1 %v424_v7 }
  0x18   :  { %382 = vmatprep.subr.bf16.mxu0 %v425_v8  ;;  %408 = vmatprep.subr.bf16.mxu1 %v425_v8 }
  0x1b   :  { %383 = vmatpush3.bf16.msra.mxu0 %v425_v8  ;;  %416 = vmatpush3.bf16.msra.mxu1 %v425_v8 }
  0x1c   :  { %384 = vmatprep.subr.bf16.mxu0 %v426_v9  ;;  %409 = vmatprep.subr.bf16.mxu1 %v426_v9 }
  0x1f   :  { %385 = vmatpush3.bf16.msra.mxu0 %v426_v9  ;;  %417 = vmatpush3.bf16.msra.mxu1 %v426_v9 }
  0x22   :  { %387 = vmatmul.mubr.bf16.vlgmr.msra.gmra.mrb[0].mxu0 %v428_v10  ;;  %395 = vmatmul.mubr.bf16.vlgmr.msra.gmra.mrb[0].mxu1 %v432_v11 }
  0x23   :  { %390 = vmatprep.mubr.bf16.mxu0 %v429_v12  ;;  %398 = vmatprep.mubr.bf16.mxu1 %v433_v13 }
  0x2a   :  { %391 = vmatmul.mubr.bf16.gmra.mrb[4].mxu0 %v430_v14  ;;  %399 = vmatmul.mubr.bf16.gmra.mrb[4].mxu1 %v434_v15 }
  0xf5   :  { %v388_v17 = vpop.f32.mrb[0].mxu0  ;;  %v396_v18 = vpop.f32.mrb[0].mxu1 }
  0xf6   :  { %248 = vst [vmem:[%s579_s2 + $0x10] sm:$0xff] %v388_v17  ;;  %v183_v19 = vpop.f32.mrb[1].mxu0  ;;  %256 = vst [vmem:[%s579_s2 + $0x50] sm:$0xff] %v396_v18  ;;  %v215_v20 = vpop.f32.mrb[1].mxu1  ;;  %v289_v28 = vmul.f32 %v388_v17, %v388_v17  ;;  %v297_v60 = vmul.f32 %v396_v18, %v396_v18 }
  0xf7   :  { %246 = vst [vmem:[%s579_s2] sm:$0xff] %v183_v19  ;;  %v389_v21 = vpop.f32.mrb[2].mxu0  ;;  %254 = vst [vmem:[%s579_s2 + $0x40] sm:$0xff] %v215_v20  ;;  %v397_v22 = vpop.f32.mrb[2].mxu1  ;;  %v287_v25 = vmul.f32 %v183_v19, %v183_v19  ;;  %v295_v54 = vmul.f32 %v215_v20, %v215_v20 }
  0xf8   :  { %249 = vst [vmem:[%s579_s2 + $0x18] sm:$0xff] %v389_v21  ;;  %v186_v23 = vpop.f32.mrb[3].mxu0  ;;  %257 = vst [vmem:[%s579_s2 + $0x58] sm:$0xff] %v397_v22  ;;  %v218_v24 = vpop.f32.mrb[3].mxu1  ;;  %v290_v31 = vmul.f32 %v389_v21, %v389_v21  ;;  %v298_v63 = vmul.f32 %v397_v22, %v397_v22 }
  0xf9   :  { %247 = vst [vmem:[%s579_s2 + $0x8] sm:$0xff] %v186_v23  ;;  %v263_v26 = vadd.f32 %v186_v23, %v183_v19  ;;  %v288_v27 = vmul.f32 %v186_v23, %v186_v23  ;;  %255 = vst [vmem:[%s579_s2 + $0x48] sm:$0xff] %v218_v24  ;;  %v296_v59 = vmul.f32 %v218_v24, %v218_v24 }
  0xfb   :  { %v264_v29 = vadd.f32 %v388_v17, %v263_v26  ;;  %v303_v30 = vadd.f32 %v288_v27, %v287_v25  ;;  %v286_v27 = vld [vmem:[%s578_s4] sm:$0x1] }
  0xfd   :  { %v304_v32 = vadd.f32 %v303_v30, %v289_v28  ;;  %v392_v33 = vpop.f32.mrb[4].mxu0  ;;  %v265_v34 = vadd.f32 %v389_v21, %v264_v29  ;;  %v400_v35 = vpop.f32.mrb[4].mxu1 }
  0xfe   :  { %252 = vst [vmem:[%s579_s2 + $0x30] sm:$0xff] %v392_v33  ;;  %v199_v36 = vpop.f32.mrb[5].mxu0  ;;  %260 = vst [vmem:[%s579_s2 + $0x70] sm:$0xff] %v400_v35  ;;  %v231_v37 = vpop.f32.mrb[5].mxu1  ;;  %v293_v48 = vmul.f32 %v392_v33, %v392_v33  ;;  %v301_v8 = vmul.f32 %v400_v35, %v400_v35 }
  0xff   :  { %250 = vst [vmem:[%s579_s2 + $0x20] sm:$0xff] %v199_v36  ;;  %v266_v38 = vadd.f32 %v265_v34, %v199_v36  ;;  %v291_v39 = vmul.f32 %v199_v36, %v199_v36  ;;  %v305_v40 = vadd.f32 %v304_v32, %v290_v31  ;;  %v393_v41 = vpop.f32.mrb[6].mxu0  ;;  %258 = vst [vmem:[%s579_s2 + $0x60] sm:$0xff] %v231_v37  ;;  %v401_v42 = vpop.f32.mrb[6].mxu1 }
 0x100   :  { %253 = vst [vmem:[%s579_s2 + $0x38] sm:$0xff] %v393_v41  ;;  %v202_v43 = vpop.f32.mrb[7].mxu0  ;;  %261 = vst [vmem:[%s579_s2 + $0x78] sm:$0xff] %v401_v42  ;;  %v234_v44 = vpop.f32.mrb[7].mxu1  ;;  %v294_v51 = vmul.f32 %v393_v41, %v393_v41  ;;  %v299_v2 = vmul.f32 %v231_v37, %v231_v37  ;;  %v302_v11 = vmul.f32 %v401_v42, %v401_v42 }
 0x101   :  { %v306_v45 = vadd.f32 %v305_v40, %v291_v39  ;;  %251 = vst [vmem:[%s579_s2 + $0x28] sm:$0xff] %v202_v43  ;;  %v267_v46 = vadd.f32 %v266_v38, %v202_v43  ;;  %v292_v47 = vmul.f32 %v202_v43, %v202_v43  ;;  %259 = vst [vmem:[%s579_s2 + $0x68] sm:$0xff] %v234_v44 }
 0x102   :  { %v300_v7 = vmul.f32 %v234_v44, %v234_v44 }
 0x103   :  { %v268_v49 = vadd.f32 %v392_v33, %v267_v46  ;;  %v307_v50 = vadd.f32 %v306_v45, %v292_v47 }
 0x105   :  { %v308_v52 = vadd.f32 %v307_v50, %v293_v48  ;;  %v269_v53 = vadd.f32 %v393_v41, %v268_v49 }
 0x107   :  { %v270_v55 = vadd.f32 %v269_v53, %v215_v20  ;;  %v309_v56 = vadd.f32 %v308_v52, %v294_v51 }
 0x109   :  { %v310_v57 = vadd.f32 %v309_v56, %v295_v54  ;;  %v271_v58 = vadd.f32 %v270_v55, %v218_v24  ;;  %v262_v24 = vld [vmem:[%s577_s3] sm:$0x1] }
 0x10b   :  { %v272_v61 = vadd.f32 %v396_v18, %v271_v58  ;;  %v311_v62 = vadd.f32 %v310_v57, %v296_v59 }
 0x10d   :  { %v312_v0 = vadd.f32 %v311_v62, %v297_v60  ;;  %v273_v1 = vadd.f32 %v397_v22, %v272_v61 }
 0x10f   :  { %v274_v3 = vadd.f32 %v273_v1, %v231_v37  ;;  %v313_v4 = vadd.f32 %v312_v0, %v298_v63 }
 0x111   :  { %v314_v5 = vadd.f32 %v313_v4, %v299_v2  ;;  %v275_v6 = vadd.f32 %v274_v3, %v234_v44 }
 0x113   :  { %v276_v9 = vadd.f32 %v400_v35, %v275_v6  ;;  %v315_v10 = vadd.f32 %v314_v5, %v300_v7 }
 0x115   :  { %v277_v12 = vadd.f32 %v401_v42, %v276_v9  ;;  %v316_v13 = vadd.f32 %v315_v10, %v301_v8 }
 0x117   :  { %v278_v14 = vrot.slane %v277_v12, 4  ;;  %v317_v15 = vadd.f32 %v316_v13, %v302_v11 }
 0x119   :  { %v279_v16 = vadd.f32 %v278_v14, %v277_v12  ;;  %v318_v17 = vrot.slane %v317_v15, 4 }
 0x11b   :  { %v280_v18 = vrot.slane %v279_v16, 2  ;;  %v319_v19 = vadd.f32 %v318_v17, %v317_v15 }
 0x11d   :  { %v281_v20 = vadd.f32 %v280_v18, %v279_v16  ;;  %v320_v21 = vrot.slane %v319_v19, 2 }
 0x11f   :  { %v282_v22 = vrot.slane %v281_v20, 1  ;;  %v321_v23 = vadd.f32 %v320_v21, %v319_v19 }
 0x121   :  { %v283_v25 = vadd.f32 %v282_v22, %v281_v20  ;;  %v322_v26 = vrot.slane %v321_v23, 1 }
 0x123   :  { %v284_v28 = vadd.f32 %v283_v25, %v262_v24  ;;  %v323_v29 = vadd.f32 %v322_v26, %v321_v23 }
 0x125   :  { %285 = vst [vmem:[%s577_s3] sm:$0x1] %v284_v28  ;;  %v324_v30 = vadd.f32 %v323_v29, %v286_v27 }
 0x127   :  { %325 = vst [vmem:[%s578_s4] sm:$0x1] %v324_v30 }

// kernel: vqvae_decoder_forward.39
= control target key start
LH: loop header
LB: loop body
LE: loop exit
PB: predicated region body
PF: predicated region fallthrough
CT: control target
= control target key end

     0   :  { %vm278_vm0 = vcmask 523264   ;;  %s1374_s1 = inlined_call_operand.vmem [shape: bf16[64,128], index: 1, kind: input, shape index: {}]   ;;  %s1375_s0 = inlined_call_operand.vmem [shape: bf16[512,64], index: 0, kind: input, shape index: {}]   ;;  %s1376_s2 = inlined_call_operand.vmem [shape: f32[1,128], index: 2, kind: input, shape index: {}]   ;;  %s1377_s3 = inlined_call_operand.vmem [shape: f32[512,128], index: 3, kind: output, shape index: {}]  }
   0x1   :  { %v917_v0 = vld [vmem:[%s1374_s1] sm:$0xff]   ;;  %v918_v1 = vld [vmem:[%s1374_s1 + $0x8] sm:$0xff]   ;;  %v919_v2 = vld [vmem:[%s1374_s1 + $0x10] sm:$0xff]  }
   0x2   :  { %837 = vmatprep.subr.bf16.mxu0 %v917_v0  ;;  %909 = vmatprep.subr.bf16.mxu1 %v917_v0  ;;  %v921_v3 = vld [vmem:[%s1375_s0] sm:$0xff]   ;;  %v920_v5 = vld [vmem:[%s1374_s1 + $0x18] sm:$0xff]   ;;  %v923_v6 = vld [vmem:[%s1375_s0 + $0x8] sm:$0xff]  }
   0x3   :  { %838 = vmatpush3.bf16.msra.mxu0 %v917_v0  ;;  %913 = vmatpush3.bf16.msra.mxu1 %v917_v0  ;;  %v922_v4 = vld [vmem:[%s1375_s0 + $0x80] sm:$0xff]   ;;  %v924_v7 = vld [vmem:[%s1375_s0 + $0x88] sm:$0xff]   ;;  %v925_v8 = vld [vmem:[%s1375_s0 + $0x10] sm:$0xff]  }
   0x4   :  { %839 = vmatprep.subr.bf16.mxu0 %v918_v1  ;;  %910 = vmatprep.subr.bf16.mxu1 %v918_v1  ;;  %v926_v9 = vld [vmem:[%s1375_s0 + $0x90] sm:$0xff]   ;;  %v927_v10 = vld [vmem:[%s1375_s0 + $0x18] sm:$0xff]   ;;  %v929_v12 = vld [vmem:[%s1375_s0 + $0x20] sm:$0xff]  }
   0x5   :  { %845 = vmatprep.mubr.msk.bf16.mxu0 %vm278_vm0, %v921_v3  ;;  %877 = vmatprep.mubr.msk.bf16.mxu1 %vm278_vm0, %v922_v4  ;;  %v928_v11 = vld [vmem:[%s1375_s0 + $0x98] sm:$0xff]   ;;  %v930_v13 = vld [vmem:[%s1375_s0 + $0xa0] sm:$0xff]   ;;  %v931_v14 = vld [vmem:[%s1375_s0 + $0x28] sm:$0xff]  }
   0x6   :  { %v932_v15 = vld [vmem:[%s1375_s0 + $0xa8] sm:$0xff]   ;;  %v933_v16 = vld [vmem:[%s1375_s0 + $0x30] sm:$0xff]   ;;  %v935_v18 = vld [vmem:[%s1375_s0 + $0x38] sm:$0xff]  }
   0x7   :  { %840 = vmatpush3.bf16.msra.mxu0 %v918_v1  ;;  %914 = vmatpush3.bf16.msra.mxu1 %v918_v1  ;;  %v934_v17 = vld [vmem:[%s1375_s0 + $0xb0] sm:$0xff]   ;;  %v936_v19 = vld [vmem:[%s1375_s0 + $0xb8] sm:$0xff]   ;;  %v937_v20 = vld [vmem:[%s1375_s0 + $0x40] sm:$0xff]  }
   0x8   :  { %841 = vmatprep.subr.bf16.mxu0 %v919_v2  ;;  %911 = vmatprep.subr.bf16.mxu1 %v919_v2  ;;  %v938_v21 = vld [vmem:[%s1375_s0 + $0xc0] sm:$0xff]   ;;  %v939_v22 = vld [vmem:[%s1375_s0 + $0x48] sm:$0xff]   ;;  %v941_v24 = vld [vmem:[%s1375_s0 + $0x50] sm:$0xff]  }
   0x9   :  { %v940_v23 = vld [vmem:[%s1375_s0 + $0xc8] sm:$0xff]   ;;  %v942_v25 = vld [vmem:[%s1375_s0 + $0xd0] sm:$0xff]   ;;  %v943_v26 = vld [vmem:[%s1375_s0 + $0x58] sm:$0xff]  }
   0xa   :  { %v944_v27 = vld [vmem:[%s1375_s0 + $0xd8] sm:$0xff]   ;;  %v945_v28 = vld [vmem:[%s1375_s0 + $0x60] sm:$0xff]   ;;  %v947_v30 = vld [vmem:[%s1375_s0 + $0x68] sm:$0xff]  }
   0xb   :  { %842 = vmatpush3.bf16.msra.mxu0 %v919_v2  ;;  %915 = vmatpush3.bf16.msra.mxu1 %v919_v2  ;;  %v946_v29 = vld [vmem:[%s1375_s0 + $0xe0] sm:$0xff]   ;;  %v948_v31 = vld [vmem:[%s1375_s0 + $0xe8] sm:$0xff]   ;;  %v949_v32 = vld [vmem:[%s1375_s0 + $0x70] sm:$0xff]  }
   0xc   :  { %843 = vmatprep.subr.bf16.mxu0 %v920_v5  ;;  %912 = vmatprep.subr.bf16.mxu1 %v920_v5  ;;  %v950_v33 = vld [vmem:[%s1375_s0 + $0xf0] sm:$0xff]   ;;  %v951_v34 = vld [vmem:[%s1375_s0 + $0x78] sm:$0xff]   ;;  %v1116_v36 = vld [vmem:[%s1376_s2] ss:$0 sm:$0xff] }
   0xd   :  { %v952_v35 = vld [vmem:[%s1375_s0 + $0xf8] sm:$0xff]  }
   0xf   :  { %844 = vmatpush3.bf16.msra.mxu0 %v920_v5  ;;  %916 = vmatpush3.bf16.msra.mxu1 %v920_v5 }
  0x12   :  { %846 = vmatmul.mubr.msk.bf16.vlgmr.msra.gmra.mrb[0].mxu0 %vm278_vm0, %v923_v6  ;;  %878 = vmatmul.mubr.msk.bf16.vlgmr.msra.gmra.mrb[0].mxu1 %vm278_vm0, %v924_v7 }
  0x13   :  { %849 = vmatprep.mubr.msk.bf16.mxu0 %vm278_vm0, %v925_v8  ;;  %881 = vmatprep.mubr.msk.bf16.mxu1 %vm278_vm0, %v926_v9 }
  0x1a   :  { %850 = vmatmul.mubr.msk.bf16.gmra.mrb[4].mxu0 %vm278_vm0, %v927_v10  ;;  %882 = vmatmul.mubr.msk.bf16.gmra.mrb[4].mxu1 %vm278_vm0, %v928_v11 }
  0x1b   :  { %853 = vmatprep.mubr.msk.bf16.mxu0 %vm278_vm0, %v929_v12  ;;  %885 = vmatprep.mubr.msk.bf16.mxu1 %vm278_vm0, %v930_v13 }
  0x22   :  { %854 = vmatmul.mubr.msk.bf16.gmra.mrb[8].mxu0 %vm278_vm0, %v931_v14  ;;  %886 = vmatmul.mubr.msk.bf16.gmra.mrb[8].mxu1 %vm278_vm0, %v932_v15 }
  0x23   :  { %857 = vmatprep.mubr.msk.bf16.mxu0 %vm278_vm0, %v933_v16  ;;  %889 = vmatprep.mubr.msk.bf16.mxu1 %vm278_vm0, %v934_v17 }
  0x2a   :  { %858 = vmatmul.mubr.msk.bf16.gmra.mrb[12].mxu0 %vm278_vm0, %v935_v18  ;;  %890 = vmatmul.mubr.msk.bf16.gmra.mrb[12].mxu1 %vm278_vm0, %v936_v19 }
  0x2b   :  { %861 = vmatprep.mubr.msk.bf16.mxu0 %vm278_vm0, %v937_v20  ;;  %893 = vmatprep.mubr.msk.bf16.mxu1 %vm278_vm0, %v938_v21 }
  0x32   :  { %862 = vmatmul.mubr.msk.bf16.gmra.mrb[16].mxu0 %vm278_vm0, %v939_v22  ;;  %894 = vmatmul.mubr.msk.bf16.gmra.mrb[16].mxu1 %vm278_vm0, %v940_v23 }
  0x33   :  { %865 = vmatprep.mubr.msk.bf16.mxu0 %vm278_vm0, %v941_v24  ;;  %897 = vmatprep.mubr.msk.bf16.mxu1 %vm278_vm0, %v942_v25 }
  0x3a   :  { %866 = vmatmul.mubr.msk.bf16.gmra.mrb[20].mxu0 %vm278_vm0, %v943_v26  ;;  %898 = vmatmul.mubr.msk.bf16.gmra.mrb[20].mxu1 %vm278_vm0, %v944_v27 }
  0x3b   :  { %869 = vmatprep.mubr.msk.bf16.mxu0 %vm278_vm0, %v945_v28  ;;  %901 = vmatprep.mubr.msk.bf16.mxu1 %vm278_vm0, %v946_v29 }
  0x42   :  { %870 = vmatmul.mubr.msk.bf16.gmra.mrb[24].mxu0 %vm278_vm0, %v947_v30  ;;  %902 = vmatmul.mubr.msk.bf16.gmra.mrb[24].mxu1 %vm278_vm0, %v948_v31 }
  0x43   :  { %873 = vmatprep.mubr.msk.bf16.mxu0 %vm278_vm0, %v949_v32  ;;  %905 = vmatprep.mubr.msk.bf16.mxu1 %vm278_vm0, %v950_v33 }
  0x4a   :  { %874 = vmatmul.mubr.msk.bf16.gmra.mrb[28].mxu0 %vm278_vm0, %v951_v34  ;;  %906 = vmatmul.mubr.msk.bf16.gmra.mrb[28].mxu1 %vm278_vm0, %v952_v35 }
  0xe5   :  { %v847_v37 = vpop.f32.mrb[0].mxu0  ;;  %v879_v38 = vpop.f32.mrb[0].mxu1 }
  0xe6   :  { %v418_v39 = vadd.f32 %v847_v37, %v1116_v36  ;;  %v546_v40 = vadd.f32 %v879_v38, %v1116_v36  ;;  %v409_v41 = vpop.f32.mrb[1].mxu0  ;;  %v537_v42 = vpop.f32.mrb[1].mxu1 }
  0xe7   :  { %v410_v43 = vadd.f32 %v1116_v36, %v409_v41  ;;  %v538_v44 = vadd.f32 %v1116_v36, %v537_v42  ;;  %v848_v45 = vpop.f32.mrb[2].mxu0  ;;  %v880_v46 = vpop.f32.mrb[2].mxu1 }
  0xe8   :  { %666 = vst [vmem:[%s1377_s3 + $0x10] sm:$0xff] %v418_v39  ;;  %698 = vst [vmem:[%s1377_s3 + $0x110] sm:$0xff] %v546_v40  ;;  %v421_v47 = vadd.f32 %v848_v45, %v1116_v36  ;;  %v549_v48 = vadd.f32 %v880_v46, %v1116_v36  ;;  %v412_v49 = vpop.f32.mrb[3].mxu0  ;;  %v540_v50 = vpop.f32.mrb[3].mxu1 }
  0xe9   :  { %664 = vst [vmem:[%s1377_s3] sm:$0xff] %v410_v43  ;;  %696 = vst [vmem:[%s1377_s3 + $0x100] sm:$0xff] %v538_v44  ;;  %v413_v51 = vadd.f32 %v1116_v36, %v412_v49  ;;  %v541_v52 = vadd.f32 %v1116_v36, %v540_v50 }
  0xea   :  { %667 = vst [vmem:[%s1377_s3 + $0x18] sm:$0xff] %v421_v47  ;;  %699 = vst [vmem:[%s1377_s3 + $0x118] sm:$0xff] %v549_v48 }
  0xeb   :  { %665 = vst [vmem:[%s1377_s3 + $0x8] sm:$0xff] %v413_v51  ;;  %697 = vst [vmem:[%s1377_s3 + $0x108] sm:$0xff] %v541_v52 }
  0xed   :  { %v851_v53 = vpop.f32.mrb[4].mxu0  ;;  %v883_v54 = vpop.f32.mrb[4].mxu1 }
  0xee   :  { %v434_v55 = vadd.f32 %v851_v53, %v1116_v36  ;;  %v562_v56 = vadd.f32 %v883_v54, %v1116_v36  ;;  %v425_v57 = vpop.f32.mrb[5].mxu0  ;;  %v553_v58 = vpop.f32.mrb[5].mxu1 }
  0xef   :  { %v426_v59 = vadd.f32 %v1116_v36, %v425_v57  ;;  %v554_v60 = vadd.f32 %v1116_v36, %v553_v58  ;;  %v852_v61 = vpop.f32.mrb[6].mxu0  ;;  %v884_v62 = vpop.f32.mrb[6].mxu1 }
  0xf0   :  { %670 = vst [vmem:[%s1377_s3 + $0x30] sm:$0xff] %v434_v55  ;;  %702 = vst [vmem:[%s1377_s3 + $0x130] sm:$0xff] %v562_v56  ;;  %v437_v63 = vadd.f32 %v852_v61, %v1116_v36  ;;  %v565_v0 = vadd.f32 %v884_v62, %v1116_v36  ;;  %v428_v1 = vpop.f32.mrb[7].mxu0  ;;  %v556_v2 = vpop.f32.mrb[7].mxu1 }
  0xf1   :  { %668 = vst [vmem:[%s1377_s3 + $0x20] sm:$0xff] %v426_v59  ;;  %700 = vst [vmem:[%s1377_s3 + $0x120] sm:$0xff] %v554_v60  ;;  %v429_v3 = vadd.f32 %v1116_v36, %v428_v1  ;;  %v557_v4 = vadd.f32 %v1116_v36, %v556_v2 }
  0xf2   :  { %671 = vst [vmem:[%s1377_s3 + $0x38] sm:$0xff] %v437_v63  ;;  %703 = vst [vmem:[%s1377_s3 + $0x138] sm:$0xff] %v565_v0 }
  0xf3   :  { %669 = vst [vmem:[%s1377_s3 + $0x28] sm:$0xff] %v429_v3  ;;  %701 = vst [vmem:[%s1377_s3 + $0x128] sm:$0xff] %v557_v4 }
  0xf5   :  { %v855_v5 = vpop.f32.mrb[8].mxu0  ;;  %v887_v6 = vpop.f32.mrb[8].mxu1 }
  0xf6   :  { %v450_v7 = vadd.f32 %v855_v5, %v1116_v36  ;;  %v578_v8 = vadd.f32 %v887_v6, %v1116_v36  ;;  %v441_v9 = vpop.f32.mrb[9].mxu0  ;;  %v569_v10 = vpop.f32.mrb[9].mxu1 }
  0xf7   :  { %v442_v11 = vadd.f32 %v1116_v36, %v441_v9  ;;  %v570_v12 = vadd.f32 %v1116_v36, %v569_v10  ;;  %v856_v13 = vpop.f32.mrb[10].mxu0  ;;  %v888_v14 = vpop.f32.mrb[10].mxu1 }
  0xf8   :  { %674 = vst [vmem:[%s1377_s3 + $0x50] sm:$0xff] %v450_v7  ;;  %706 = vst [vmem:[%s1377_s3 + $0x150] sm:$0xff] %v578_v8  ;;  %v453_v15 = vadd.f32 %v856_v13, %v1116_v36  ;;  %v581_v16 = vadd.f32 %v888_v14, %v1116_v36  ;;  %v444_v17 = vpop.f32.mrb[11].mxu0  ;;  %v572_v18 = vpop.f32.mrb[11].mxu1 }
  0xf9   :  { %672 = vst [vmem:[%s1377_s3 + $0x40] sm:$0xff] %v442_v11  ;;  %704 = vst [vmem:[%s1377_s3 + $0x140] sm:$0xff] %v570_v12  ;;  %v445_v19 = vadd.f32 %v1116_v36, %v444_v17  ;;  %v573_v20 = vadd.f32 %v1116_v36, %v572_v18 }
  0xfa   :  { %675 = vst [vmem:[%s1377_s3 + $0x58] sm:$0xff] %v453_v15  ;;  %707 = vst [vmem:[%s1377_s3 + $0x158] sm:$0xff] %v581_v16 }
  0xfb   :  { %673 = vst [vmem:[%s1377_s3 + $0x48] sm:$0xff] %v445_v19  ;;  %705 = vst [vmem:[%s1377_s3 + $0x148] sm:$0xff] %v573_v20 }
  0xfd   :  { %v859_v21 = vpop.f32.mrb[12].mxu0  ;;  %v891_v22 = vpop.f32.mrb[12].mxu1 }
  0xfe   :  { %v466_v23 = vadd.f32 %v859_v21, %v1116_v36  ;;  %v594_v24 = vadd.f32 %v891_v22, %v1116_v36  ;;  %v457_v25 = vpop.f32.mrb[13].mxu0  ;;  %v585_v26 = vpop.f32.mrb[13].mxu1 }
  0xff   :  { %v458_v27 = vadd.f32 %v1116_v36, %v457_v25  ;;  %v586_v28 = vadd.f32 %v1116_v36, %v585_v26  ;;  %v860_v29 = vpop.f32.mrb[14].mxu0  ;;  %v892_v30 = vpop.f32.mrb[14].mxu1 }
 0x100   :  { %678 = vst [vmem:[%s1377_s3 + $0x70] sm:$0xff] %v466_v23  ;;  %710 = vst [vmem:[%s1377_s3 + $0x170] sm:$0xff] %v594_v24  ;;  %v469_v31 = vadd.f32 %v860_v29, %v1116_v36  ;;  %v597_v32 = vadd.f32 %v892_v30, %v1116_v36  ;;  %v460_v33 = vpop.f32.mrb[15].mxu0  ;;  %v588_v34 = vpop.f32.mrb[15].mxu1 }
 0x101   :  { %676 = vst [vmem:[%s1377_s3 + $0x60] sm:$0xff] %v458_v27  ;;  %708 = vst [vmem:[%s1377_s3 + $0x160] sm:$0xff] %v586_v28  ;;  %v461_v35 = vadd.f32 %v1116_v36, %v460_v33  ;;  %v589_v37 = vadd.f32 %v1116_v36, %v588_v34 }
 0x102   :  { %679 = vst [vmem:[%s1377_s3 + $0x78] sm:$0xff] %v469_v31  ;;  %711 = vst [vmem:[%s1377_s3 + $0x178] sm:$0xff] %v597_v32 }
 0x103   :  { %677 = vst [vmem:[%s1377_s3 + $0x68] sm:$0xff] %v461_v35  ;;  %709 = vst [vmem:[%s1377_s3 + $0x168] sm:$0xff] %v589_v37 }
 0x105   :  { %v863_v38 = vpop.f32.mrb[16].mxu0  ;;  %v895_v39 = vpop.f32.mrb[16].mxu1 }
 0x106   :  { %v482_v40 = vadd.f32 %v863_v38, %v1116_v36  ;;  %v610_v41 = vadd.f32 %v895_v39, %v1116_v36  ;;  %v473_v42 = vpop.f32.mrb[17].mxu0  ;;  %v601_v43 = vpop.f32.mrb[17].mxu1 }
 0x107   :  { %v474_v44 = vadd.f32 %v1116_v36, %v473_v42  ;;  %v602_v45 = vadd.f32 %v1116_v36, %v601_v43  ;;  %v864_v46 = vpop.f32.mrb[18].mxu0  ;;  %v896_v47 = vpop.f32.mrb[18].mxu1 }
 0x108   :  { %682 = vst [vmem:[%s1377_s3 + $0x90] sm:$0xff] %v482_v40  ;;  %714 = vst [vmem:[%s1377_s3 + $0x190] sm:$0xff] %v610_v41  ;;  %v485_v48 = vadd.f32 %v864_v46, %v1116_v36  ;;  %v613_v49 = vadd.f32 %v896_v47, %v1116_v36  ;;  %v476_v50 = vpop.f32.mrb[19].mxu0  ;;  %v604_v51 = vpop.f32.mrb[19].mxu1 }
 0x109   :  { %680 = vst [vmem:[%s1377_s3 + $0x80] sm:$0xff] %v474_v44  ;;  %712 = vst [vmem:[%s1377_s3 + $0x180] sm:$0xff] %v602_v45  ;;  %v477_v52 = vadd.f32 %v1116_v36, %v476_v50  ;;  %v605_v53 = vadd.f32 %v1116_v36, %v604_v51 }
 0x10a   :  { %683 = vst [vmem:[%s1377_s3 + $0x98] sm:$0xff] %v485_v48  ;;  %715 = vst [vmem:[%s1377_s3 + $0x198] sm:$0xff] %v613_v49 }
 0x10b   :  { %681 = vst [vmem:[%s1377_s3 + $0x88] sm:$0xff] %v477_v52  ;;  %713 = vst [vmem:[%s1377_s3 + $0x188] sm:$0xff] %v605_v53 }
 0x10d   :  { %v867_v54 = vpop.f32.mrb[20].mxu0  ;;  %v899_v55 = vpop.f32.mrb[20].mxu1 }
 0x10e   :  { %v498_v56 = vadd.f32 %v867_v54, %v1116_v36  ;;  %v626_v57 = vadd.f32 %v899_v55, %v1116_v36  ;;  %v489_v58 = vpop.f32.mrb[21].mxu0  ;;  %v617_v59 = vpop.f32.mrb[21].mxu1 }
 0x10f   :  { %v490_v60 = vadd.f32 %v1116_v36, %v489_v58  ;;  %v618_v61 = vadd.f32 %v1116_v36, %v617_v59  ;;  %v868_v62 = vpop.f32.mrb[22].mxu0  ;;  %v900_v63 = vpop.f32.mrb[22].mxu1 }
 0x110   :  { %686 = vst [vmem:[%s1377_s3 + $0xb0] sm:$0xff] %v498_v56  ;;  %718 = vst [vmem:[%s1377_s3 + $0x1b0] sm:$0xff] %v626_v57  ;;  %v501_v0 = vadd.f32 %v868_v62, %v1116_v36  ;;  %v629_v1 = vadd.f32 %v900_v63, %v1116_v36  ;;  %v492_v2 = vpop.f32.mrb[23].mxu0  ;;  %v620_v3 = vpop.f32.mrb[23].mxu1 }
 0x111   :  { %684 = vst [vmem:[%s1377_s3 + $0xa0] sm:$0xff] %v490_v60  ;;  %716 = vst [vmem:[%s1377_s3 + $0x1a0] sm:$0xff] %v618_v61  ;;  %v493_v4 = vadd.f32 %v1116_v36, %v492_v2  ;;  %v621_v5 = vadd.f32 %v1116_v36, %v620_v3 }
 0x112   :  { %687 = vst [vmem:[%s1377_s3 + $0xb8] sm:$0xff] %v501_v0  ;;  %719 = vst [vmem:[%s1377_s3 + $0x1b8] sm:$0xff] %v629_v1 }
 0x113   :  { %685 = vst [vmem:[%s1377_s3 + $0xa8] sm:$0xff] %v493_v4  ;;  %717 = vst [vmem:[%s1377_s3 + $0x1a8] sm:$0xff] %v621_v5 }
 0x115   :  { %v871_v6 = vpop.f32.mrb[24].mxu0  ;;  %v903_v7 = vpop.f32.mrb[24].mxu1 }
 0x116   :  { %v514_v8 = vadd.f32 %v871_v6, %v1116_v36  ;;  %v642_v9 = vadd.f32 %v903_v7, %v1116_v36  ;;  %v505_v10 = vpop.f32.mrb[25].mxu0  ;;  %v633_v11 = vpop.f32.mrb[25].mxu1 }
 0x117   :  { %v506_v12 = vadd.f32 %v1116_v36, %v505_v10  ;;  %v634_v13 = vadd.f32 %v1116_v36, %v633_v11  ;;  %v872_v14 = vpop.f32.mrb[26].mxu0  ;;  %v904_v15 = vpop.f32.mrb[26].mxu1 }
 0x118   :  { %690 = vst [vmem:[%s1377_s3 + $0xd0] sm:$0xff] %v514_v8  ;;  %722 = vst [vmem:[%s1377_s3 + $0x1d0] sm:$0xff] %v642_v9  ;;  %v517_v16 = vadd.f32 %v872_v14, %v1116_v36  ;;  %v645_v17 = vadd.f32 %v904_v15, %v1116_v36  ;;  %v508_v18 = vpop.f32.mrb[27].mxu0  ;;  %v636_v19 = vpop.f32.mrb[27].mxu1 }
 0x119   :  { %688 = vst [vmem:[%s1377_s3 + $0xc0] sm:$0xff] %v506_v12  ;;  %720 = vst [vmem:[%s1377_s3 + $0x1c0] sm:$0xff] %v634_v13  ;;  %v509_v20 = vadd.f32 %v1116_v36, %v508_v18  ;;  %v637_v21 = vadd.f32 %v1116_v36, %v636_v19 }
 0x11a   :  { %691 = vst [vmem:[%s1377_s3 + $0xd8] sm:$0xff] %v517_v16  ;;  %723 = vst [vmem:[%s1377_s3 + $0x1d8] sm:$0xff] %v645_v17 }
 0x11b   :  { %689 = vst [vmem:[%s1377_s3 + $0xc8] sm:$0xff] %v509_v20  ;;  %721 = vst [vmem:[%s1377_s3 + $0x1c8] sm:$0xff] %v637_v21 }
 0x11d   :  { %v875_v22 = vpop.f32.mrb[28].mxu0  ;;  %v907_v23 = vpop.f32.mrb[28].mxu1 }
 0x11e   :  { %v530_v24 = vadd.f32 %v875_v22, %v1116_v36  ;;  %v658_v25 = vadd.f32 %v907_v23, %v1116_v36  ;;  %v521_v26 = vpop.f32.mrb[29].mxu0  ;;  %v649_v27 = vpop.f32.mrb[29].mxu1 }
 0x11f   :  { %v522_v28 = vadd.f32 %v1116_v36, %v521_v26  ;;  %v650_v29 = vadd.f32 %v1116_v36, %v649_v27  ;;  %v876_v30 = vpop.f32.mrb[30].mxu0  ;;  %v908_v31 = vpop.f32.mrb[30].mxu1 }
 0x120   :  { %694 = vst [vmem:[%s1377_s3 + $0xf0] sm:$0xff] %v530_v24  ;;  %726 = vst [vmem:[%s1377_s3 + $0x1f0] sm:$0xff] %v658_v25  ;;  %v533_v32 = vadd.f32 %v876_v30, %v1116_v36  ;;  %v661_v33 = vadd.f32 %v908_v31, %v1116_v36  ;;  %v524_v34 = vpop.f32.mrb[31].mxu0  ;;  %v652_v35 = vpop.f32.mrb[31].mxu1 }
 0x121   :  { %692 = vst [vmem:[%s1377_s3 + $0xe0] sm:$0xff] %v522_v28  ;;  %724 = vst [vmem:[%s1377_s3 + $0x1e0] sm:$0xff] %v650_v29  ;;  %v525_v37 = vadd.f32 %v1116_v36, %v524_v34  ;;  %v653_v38 = vadd.f32 %v1116_v36, %v652_v35 }
 0x122   :  { %695 = vst [vmem:[%s1377_s3 + $0xf8] sm:$0xff] %v533_v32  ;;  %727 = vst [vmem:[%s1377_s3 + $0x1f8] sm:$0xff] %v661_v33 }
 0x123   :  { %693 = vst [vmem:[%s1377_s3 + $0xe8] sm:$0xff] %v525_v37  ;;  %725 = vst [vmem:[%s1377_s3 + $0x1e8] sm:$0xff] %v653_v38 }

</bundles_post_ra>
